<compile_context>
chip_gen: v7x
topology: tpu7x:2x2x1
jax: 0.10.0
libtpu: 0.0.40
codegen_flags: <defaults>
</compile_context>

<pallas_src>
import functools
import math

import jax
import jax.numpy as jnp
from jax.experimental import pallas as pl
from jax.experimental.pallas import tpu as pltpu

# bf16 MXU operands (f32 accumulation) only when actually targeting TPU hardware.
_ON_TPU = jax.default_backend() == "tpu"
_COMPUTE_DTYPE = jnp.bfloat16 if _ON_TPU else jnp.float32

# Explicit scoped-VMEM limit (safe on v5e/v6e/v7x); re-derive if block sizes grow.
_VMEM_LIMIT = 32 * 1024 * 1024


def _round_up(n, m):
    return ((n + m - 1) // m) * m


def _shift_rows(x, direction):
    """Row shift: direction=+1 -> row t holds x[t-1]; -1 -> row t holds x[t+1].

    Wrapped rows are zeroed by the caller's path-boundary masks, so a rotate is a
    drop-in.  On TPU with 8-aligned row counts this uses pltpu.roll (XLU slot,
    co-issues with MXU/VPU, no sliced+concat VMEM copy); otherwise a portable
    slice+concat fallback (CPU / interpret mode, or tiny unaligned full blocks).
    Rolls are done on the 32-bit residual carry to avoid packed-sublane rotates.
    """
    m = x.shape[0]
    if _ON_TPU and m % 8 == 0:
        return pltpu.roll(x, direction % m, axis=0)
    z = jnp.zeros((1, x.shape[1]), x.dtype)
    if direction > 0:
        return jnp.concatenate([z, x[:-1]], axis=0)
    return jnp.concatenate([x[1:], z], axis=0)


# -----------------------------------------------------------------------------------
# Kernel 1 (per key, fused): atom->path mix + path residual conv blocks + the
# un-normalized path->atom reduction, over blocks of whole paths.
# -----------------------------------------------------------------------------------
def _path_key_kernel(inc_ref, invcnt_p_ref, xw_ref, b_in_ref, xpaths_ref,
                     w3_ref, bconv_ref, conv_out_ref, p2a_out_ref, *, depth, L):
    i = pl.program_id(0)

    # -- mix into paths:  y = x_paths + relu( (Inc @ (X @ W_a2p)) / cnt_p + b ).
    # X @ W_a2p is grid-invariant and hoisted into the wrapper (xw_ref); the 1/count
    # scatter-mean normalization is applied here in f32, so the (bf16) incidence
    # matrix only carries exact small-integer counts.
    h = jnp.dot(inc_ref[...], xw_ref[...], preferred_element_type=jnp.float32)
    h = h * invcnt_p_ref[...] + b_in_ref[...]
    y = xpaths_ref[...] + jnp.maximum(h, 0.0)                     # (m_blk, C) f32

    # -- path residual blocks: depth x [Conv1d(k=3, zero pad) + ReLU + residual];
    # each depth is one fused (m_blk, 3C) @ (3C, C) matmul.  Path-boundary masks are
    # generated in-kernel from an iota (removes two lane-sparse mask DMAs).
    m_blk, C = y.shape
    pos = jax.lax.broadcasted_iota(jnp.int32, (m_blk, 1), 0) % L
    not_first = (pos != 0).astype(jnp.float32)
    not_last = (pos != (L - 1)).astype(jnp.float32)
    # TODO(synk): for path_depth > ~4 switch to lax.fori_loop(..., unroll=k) with
    # dynamic w3_ref indexing to bound vreg live ranges.
    for d in range(depth):
        xm = _shift_rows(y, +1) * not_first       # tap t-1 (zero pad at path start)
        xp = _shift_rows(y, -1) * not_last        # tap t+1 (zero pad at path end)
        xcat = jnp.concatenate([xm, y, xp], axis=1).astype(_COMPUTE_DTYPE)
        hc = jnp.dot(xcat, w3_ref[d], preferred_element_type=jnp.float32)
        y = y + jnp.maximum(hc + bconv_ref[d], 0.0)               # f32 residual carry
    conv_out_ref[...] = y

    # -- mix into atoms, partial: accumulate Inc^T @ y over path blocks (the 1/cnt_a
    # normalization, (C,C) Linear, ReLU and atom residual run once in the epilogue).
    @pl.when(i == 0)
    def _():
        p2a_out_ref[...] = jnp.zeros_like(p2a_out_ref)

    p2a_out_ref[...] += jax.lax.dot_general(
        inc_ref[...], y.astype(_COMPUTE_DTYPE),
        dimension_numbers=(((0,), (0,)), ((), ())),
        preferred_element_type=jnp.float32)


def path_key_forward(x_paths_k, inc, inv_cnt_p, xw, b_in, w3_stack, bconv_stack,
                     *, L, num_atoms, target_block_rows=1024):
    """Fused per-key pipeline (one pallas_call): atom->path mix, path residual conv
    blocks, and the un-normalized path->atom reduction."""
    M, C = x_paths_k.shape
    P = M // L
    A = inc.shape[1]
    depth = w3_stack.shape[0]

    # Whole paths per block; block row count must be a multiple of 8 unless a single
    # block covers the full (unpadded) array (full dims are exempt from the rule).
    unit = 8 // math.gcd(L, 8)
    p_cap = max(unit, ((target_block_rows // max(L, 1)) // unit) * unit)

    inc_c = inc.astype(_COMPUTE_DTYPE)
    xf = x_paths_k
    icp = inv_cnt_p
    if P <= p_cap:
        p_blk, p_pad = P, P                 # single full-dims block -> no padding copies
    else:
        p_blk = p_cap
        p_pad = _round_up(P, p_blk)
        pad = (p_pad - P) * L
        # Padded rows are whole phantom paths with zero incidence rows, so they cannot
        # leak into real outputs (boundary masks + zero rows in the p2a reduction).
        xf = jnp.concatenate([xf, jnp.zeros((pad, C), xf.dtype)], axis=0)
        inc_c = jnp.concatenate([inc_c, jnp.zeros((pad, A), inc_c.dtype)], axis=0)
        icp = jnp.concatenate([icp, jnp.zeros((pad, 1), icp.dtype)], axis=0)

    m_blk = p_blk * L
    # TODO(synk): K-tile the A (atom) reduction axis for large graphs (see header TODO).
    conv_out, p2a_partial = pl.pallas_call(
        functools.partial(_path_key_kernel, depth=depth, L=L),
        out_shape=(jax.ShapeDtypeStruct((p_pad * L, C), jnp.float32),
                   jax.ShapeDtypeStruct((num_atoms, C), jnp.float32)),
        grid=(p_pad // p_blk,),
        in_specs=[
            pl.BlockSpec((m_blk, A), lambda i: (i, 0)),         # incidence (slots x atoms)
            pl.BlockSpec((m_blk, 1), lambda i: (i, 0)),         # 1 / cnt_p
            pl.BlockSpec((A, C), lambda i: (0, 0)),             # X @ W_a2p (hoisted)
            pl.BlockSpec((1, C), lambda i: (0, 0)),             # atom->path bias
            pl.BlockSpec((m_blk, C), lambda i: (i, 0)),         # path residual base
            pl.BlockSpec((depth, 3 * C, C), lambda i: (0, 0, 0)),
            pl.BlockSpec((depth, 1, C), lambda i: (0, 0, 0)),
        ],
        out_specs=(
            pl.BlockSpec((m_blk, C), lambda i: (i, 0)),         # conved paths
            pl.BlockSpec((num_atoms, C), lambda i: (0, 0)),     # accumulated p2a partial
        ),
        compiler_params=pltpu.CompilerParams(
            # The p2a partial accumulates across path blocks -> sequential grid axis.
            dimension_semantics=("arbitrary",),
            vmem_limit_bytes=_VMEM_LIMIT,
        ),
    )(inc_c, icp, xw.astype(_COMPUTE_DTYPE), b_in, xf,
      w3_stack.astype(_COMPUTE_DTYPE), bconv_stack)
    if p_pad != P:
        conv_out = conv_out[:M]
    return conv_out, p2a_partial


# -----------------------------------------------------------------------------------
# Kernel 2 (atom-side epilogue, one call for ALL keys):
#   x_out = x + sum_k relu( (partial_k / cnt_a_k) @ W_k + b_k )
# -----------------------------------------------------------------------------------
def _mix_into_atoms_kernel(x_ref, part_ref, invcnt_a_ref, w_ref, b_ref, out_ref):
    k = pl.program_id(0)

    @pl.when(k == 0)
    def _():
        out_ref[...] = x_ref[...]

    sc = part_ref[0] * invcnt_a_ref[0]                # scatter-mean normalization, f32
    h = jnp.dot(sc.astype(_COMPUTE_DTYPE), w_ref[0],
                preferred_element_type=jnp.float32) + b_ref[0]
    out_ref[...] += jnp.maximum(h, 0.0)


def mix_into_atoms(x, partials, inv_cnt_a, w_stack, b_stack):
    nk, A, C = partials.shape
    return pl.pallas_call(
        _mix_into_atoms_kernel,
        out_shape=jax.ShapeDtypeStruct((A, C), jnp.float32),
        grid=(nk,),
        in_specs=[
            pl.BlockSpec((A, C), lambda k: (0, 0)),
            pl.BlockSpec((1, A, C), lambda k: (k, 0, 0)),
            pl.BlockSpec((1, A, 1), lambda k: (k, 0, 0)),
            pl.BlockSpec((1, C, C), lambda k: (k, 0, 0)),
            pl.BlockSpec((1, 1, C), lambda k: (k, 0, 0)),
        ],
        out_specs=pl.BlockSpec((A, C), lambda k: (0, 0)),
        compiler_params=pltpu.CompilerParams(
            dimension_semantics=("arbitrary",),     # accumulates over keys
            vmem_limit_bytes=_VMEM_LIMIT,
        ),
    )(x, partials, inv_cnt_a, w_stack.astype(_COMPUTE_DTYPE), b_stack)


# -----------------------------------------------------------------------------------
# Glue: un-normalized incidence counts + scatter-mean inverse counts.
#   Inc[p, a] = #(col==p & row==a)   (exact small integers, safe in bf16)
#   inv_cnt_p[p] = 1 / #(col==p)     (applied in f32 in the kernels)
#   inv_cnt_a[a] = 1 / #(row==a)
# -----------------------------------------------------------------------------------
def build_incidence(row, col, num_atoms, num_slots):
    inc = jnp.zeros((num_slots, num_atoms), jnp.float32).at[col, row].add(1.0)
    cnt_p = jnp.sum(inc, axis=1, keepdims=True)
    inv_cnt_p = jnp.where(cnt_p > 0, 1.0 / jnp.maximum(cnt_p, 1.0), 0.0)
    cnt_a = jnp.sum(inc, axis=0)[:, None]
    inv_cnt_a = jnp.where(cnt_a > 0, 1.0 / jnp.maximum(cnt_a, 1.0), 0.0)
    return inc, inv_cnt_p, inv_cnt_a


# -----------------------------------------------------------------------------------
# PathConvolutionLayer forward.
# -----------------------------------------------------------------------------------
def path_convolution_forward(params, x, x_paths, atom_to_path_map, *, path_lengths):
    num_atoms = x.shape[0]
    keys = [str(k) for k in path_lengths]

    conved = {}
    partials, inv_cnt_as, w_p2a, b_p2a = [], [], [], []
    for L, key in zip(path_lengths, keys):
        row, col = atom_to_path_map[key]
        num_slots = x_paths[key].shape[0]
        inc, inv_cnt_p, inv_cnt_a = build_incidence(row, col, num_atoms, num_slots)

        W_in, b_in = params["atom_to_path"][key]
        xw = jnp.dot(x, W_in)     # grid-invariant (A,C)@(C,C) hoisted out of the kernel
        w3_stack, bconv_stack = params["path_block"][key]

        conv_k, part_k = path_key_forward(
            x_paths[key], inc, inv_cnt_p, xw, b_in, w3_stack, bconv_stack,
            L=L, num_atoms=num_atoms)
        conved[key] = conv_k
        partials.append(part_k)
        inv_cnt_as.append(inv_cnt_a)
        W_out, b_out = params["path_to_atom"][key]
        w_p2a.append(W_out)
        b_p2a.append(b_out)

    # x_out = x + sum_k relu(Linear_k(scatter_mean_k(conved_k))) -- identical to the
    # sequential residual accumulation in the reference module.
    x_out = mix_into_atoms(x, jnp.stack(partials), jnp.stack(inv_cnt_as),
                           jnp.stack(w_p2a), jnp.stack(b_p2a))
    return x_out, conved


def init_params(key, num_channels, path_depth, path_lengths):
    params = {"atom_to_path": {}, "path_to_atom": {}, "path_block": {}}
    C = num_channels
    for k in path_lengths:
        kk = str(k)
        key, k1, k2, k3, k4, k5, k6 = jax.random.split(key, 7)
        params["atom_to_path"][kk] = (
            0.1 * jax.random.normal(k1, (C, C), jnp.float32),
            0.1 * jax.random.normal(k2, (1, C), jnp.float32),
        )
        params["path_to_atom"][kk] = (
            0.1 * jax.random.normal(k3, (C, C), jnp.float32),
            0.1 * jax.random.normal(k4, (1, C), jnp.float32),
        )
        # fused conv weights: rows = [tap t-1 ; tap t ; tap t+1], each (C_in, C_out);
        # bias: [depth, 1, C].
        params["path_block"][kk] = (
            0.1 * jax.random.normal(k5, (path_depth, 3 * C, C), jnp.float32),
            0.1 * jax.random.normal(k6, (path_depth, 1, C), jnp.float32),
        )
    return params


if __name__ == "__main__":
    num_channels = 128          # multiple of 128 -> lane-dense writebacks
    path_depth = 2
    path_lengths = (4, 6)
    num_atoms = 16
    num_paths = {4: 3, 6: 2}

    root = jax.random.PRNGKey(0)
    kx, kp4, kp6, kr4, kr6, kparam = jax.random.split(root, 6)

    x = jax.random.normal(kx, (num_atoms, num_channels), jnp.float32)

    x_paths = {}
    atom_to_path_map = {}
    for k, kp, kr in zip(path_lengths, (kp4, kp6), (kr4, kr6)):
        slots = num_paths[k] * k
        x_paths[str(k)] = jax.random.normal(kp, (slots, num_channels), jnp.float32)
        row = jax.random.randint(kr, (slots,), 0, num_atoms, jnp.int32)   # atom per slot
        col = jnp.arange(slots, dtype=jnp.int32)                          # path-slot idx
        atom_to_path_map[str(k)] = (row, col)

    params = init_params(kparam, num_channels, path_depth, path_lengths)

    fwd = jax.jit(path_convolution_forward, static_argnames=("path_lengths",))
    x_out, x_paths_out = fwd(params, x, x_paths, atom_to_path_map,
                             path_lengths=path_lengths)

    x_out = jax.block_until_ready(x_out)
    for v in x_paths_out.values():
        jax.block_until_ready(v)

    assert x_out.shape == (num_atoms, num_channels)
    assert bool(jnp.all(jnp.isfinite(x_out)))
    for k in path_lengths:
        assert x_paths_out[str(k)].shape == (num_paths[k] * k, num_channels)
        assert bool(jnp.all(jnp.isfinite(x_paths_out[str(k)])))

    print("KERNEL_OK")
</pallas_src>

<mosaic_0001>
module attributes {stable_mosaic.version = 11 : i64} {
  func.func @_path_key_kernel(%arg0: i32, %arg1: memref<12x16xf32, #tpu.memory_space<vmem>>, %arg2: memref<12x1xf32, #tpu.memory_space<vmem>>, %arg3: memref<16x128xf32, #tpu.memory_space<vmem>>, %arg4: memref<1x128xf32, #tpu.memory_space<vmem>>, %arg5: memref<12x128xf32, #tpu.memory_space<vmem>>, %arg6: memref<2x384x128xf32, #tpu.memory_space<vmem>>, %arg7: memref<2x1x128xf32, #tpu.memory_space<vmem>>, %arg8: memref<12x128xf32, #tpu.memory_space<vmem>>, %arg9: memref<16x128xf32, #tpu.memory_space<vmem>>) attributes {dimension_semantics = [#tpu.dimension_semantics<arbitrary>], iteration_bounds = array<i64: 1>, scalar_prefetch = 0 : i64, scratch_operands = 0 : i64, tpu.core_type = #tpu.core_type<tc>, window_params = [{transform_indices = @transform_0, window_bounds = array<i64: 12, 16>}, {transform_indices = @transform_1, window_bounds = array<i64: 12, 1>}, {pipeline_mode = #tpu.pipeline_mode<synchronous>, transform_indices = @transform_2, window_bounds = array<i64: 16, 128>}, {pipeline_mode = #tpu.pipeline_mode<synchronous>, transform_indices = @transform_3, window_bounds = array<i64: 1, 128>}, {transform_indices = @transform_4, window_bounds = array<i64: 12, 128>}, {pipeline_mode = #tpu.pipeline_mode<synchronous>, transform_indices = @transform_5, window_bounds = array<i64: 2, 384, 128>}, {pipeline_mode = #tpu.pipeline_mode<synchronous>, transform_indices = @transform_6, window_bounds = array<i64: 2, 1, 128>}, {transform_indices = @transform_7, window_bounds = array<i64: 12, 128>}, {pipeline_mode = #tpu.pipeline_mode<synchronous>, transform_indices = @transform_8, window_bounds = array<i64: 16, 128>}]} {
    %c0 = arith.constant 0 : index
    %c0_0 = arith.constant 0 : index
    %0 = vector.load %arg1[%c0, %c0_0] : memref<12x16xf32, #tpu.memory_space<vmem>>, vector<12x16xf32>
    %c0_1 = arith.constant 0 : index
    %c0_2 = arith.constant 0 : index
    %1 = vector.load %arg3[%c0_1, %c0_2] : memref<16x128xf32, #tpu.memory_space<vmem>>, vector<16x128xf32>
    %cst = arith.constant dense<0.000000e+00> : vector<12x128xf32>
    %2 = tpu.matmul %0, %1, %cst {dimension_numbers = #tpu.dot_dimension_numbers<[1], [0], [0], [1], [0, 0, 1, 1], [], []>} : vector<12x16xf32>, vector<16x128xf32>, vector<12x128xf32> -> vector<12x128xf32>
    %c0_3 = arith.constant 0 : index
    %c0_4 = arith.constant 0 : index
    %3 = vector.load %arg2[%c0_3, %c0_4] : memref<12x1xf32, #tpu.memory_space<vmem>>, vector<12x1xf32>
    %4 = vector.broadcast %3 : vector<12x1xf32> to vector<12x128xf32>
    %5 = arith.mulf %2, %4 : vector<12x128xf32>
    %c0_5 = arith.constant 0 : index
    %c0_6 = arith.constant 0 : index
    %6 = vector.load %arg4[%c0_5, %c0_6] : memref<1x128xf32, #tpu.memory_space<vmem>>, vector<1x128xf32>
    %7 = vector.broadcast %6 : vector<1x128xf32> to vector<12x128xf32>
    %8 = arith.addf %5, %7 : vector<12x128xf32>
    %c0_7 = arith.constant 0 : index
    %c0_8 = arith.constant 0 : index
    %9 = vector.load %arg5[%c0_7, %c0_8] : memref<12x128xf32, #tpu.memory_space<vmem>>, vector<12x128xf32>
    %cst_9 = arith.constant 0.000000e+00 : f32
    %10 = vector.broadcast %cst_9 : f32 to vector<12x128xf32>
    %11 = arith.maximumf %8, %10 : vector<12x128xf32>
    %12 = arith.addf %9, %11 : vector<12x128xf32>
    %13 = tpu.iota {dimensions = array<i32: 0>} : vector<12x1xi32>
    %c6_i32 = arith.constant 6 : i32
    %c0_i32 = arith.constant 0 : i32
    %14 = arith.cmpi eq, %c6_i32, %c0_i32 : i32
    %c1_i32 = arith.constant 1 : i32
    %15 = arith.select %14, %c1_i32, %c6_i32 : i32
    %16 = vector.broadcast %15 : i32 to vector<12x1xi32>
    %17 = arith.remsi %13, %16 : vector<12x1xi32>
    %c0_i32_10 = arith.constant 0 : i32
    %18 = vector.broadcast %c0_i32_10 : i32 to vector<12x1xi32>
    %19 = arith.cmpi ne, %17, %18 : vector<12x1xi32>
    %c0_i32_11 = arith.constant 0 : i32
    %20 = vector.broadcast %c0_i32_11 : i32 to vector<12x1xi32>
    %21 = arith.cmpi slt, %17, %20 : vector<12x1xi32>
    %c0_i32_12 = arith.constant 0 : i32
    %22 = arith.cmpi slt, %15, %c0_i32_12 : i32
    %23 = vector.broadcast %22 : i1 to vector<12x1xi1>
    %24 = vector.broadcast %23 : vector<12x1xi1> to vector<12x1xi1>
    %25 = arith.xori %21, %24 : vector<12x1xi1>
    %26 = arith.andi %25, %19 : vector<12x1xi1>
    %27 = vector.broadcast %15 : i32 to vector<12x1xi32>
    %28 = arith.addi %17, %27 : vector<12x1xi32>
    %29 = arith.select %26, %28, %17 : vector<12x1xi1>, vector<12x1xi32>
    %c0_i32_13 = arith.constant 0 : i32
    %30 = vector.broadcast %c0_i32_13 : i32 to vector<12x1xi32>
    %31 = arith.cmpi ne, %29, %30 : vector<12x1xi32>
    %32 = arith.extui %31 : vector<12x1xi1> to vector<12x1xi32>
    %33 = arith.sitofp %32 : vector<12x1xi32> to vector<12x1xf32>
    %c5_i32 = arith.constant 5 : i32
    %34 = vector.broadcast %c5_i32 : i32 to vector<12x1xi32>
    %35 = arith.cmpi ne, %29, %34 : vector<12x1xi32>
    %36 = arith.extui %35 : vector<12x1xi1> to vector<12x1xi32>
    %37 = arith.sitofp %36 : vector<12x1xi32> to vector<12x1xf32>
    %cst_14 = arith.constant 0.000000e+00 : f32
    %38 = vector.broadcast %cst_14 : f32 to vector<1x128xf32>
    %39 = vector.extract_strided_slice %12 {offsets = [0, 0], sizes = [11, 128], strides = [1, 1]} : vector<12x128xf32> to vector<11x128xf32>
    %40 = tpu.concatenate %38, %39 in 0 : vector<1x128xf32>, vector<11x128xf32> -> vector<12x128xf32>
    %41 = vector.broadcast %33 : vector<12x1xf32> to vector<12x128xf32>
    %42 = arith.mulf %40, %41 : vector<12x128xf32>
    %cst_15 = arith.constant 0.000000e+00 : f32
    %43 = vector.broadcast %cst_15 : f32 to vector<1x128xf32>
    %44 = vector.extract_strided_slice %12 {offsets = [1, 0], sizes = [11, 128], strides = [1, 1]} : vector<12x128xf32> to vector<11x128xf32>
    %45 = tpu.concatenate %44, %43 in 0 : vector<11x128xf32>, vector<1x128xf32> -> vector<12x128xf32>
    %46 = vector.broadcast %37 : vector<12x1xf32> to vector<12x128xf32>
    %47 = arith.mulf %45, %46 : vector<12x128xf32>
    %48 = tpu.concatenate %42, %12, %47 in 1 : vector<12x128xf32>, vector<12x128xf32>, vector<12x128xf32> -> vector<12x384xf32>
    %c0_16 = arith.constant 0 : index
    %c0_17 = arith.constant 0 : index
    %c0_18 = arith.constant 0 : index
    %49 = vector.load %arg6[%c0_16, %c0_17, %c0_18] : memref<2x384x128xf32, #tpu.memory_space<vmem>>, vector<1x384x128xf32>
    %50 = vector.shape_cast %49 : vector<1x384x128xf32> to vector<384x128xf32>
    %cst_19 = arith.constant dense<0.000000e+00> : vector<12x128xf32>
    %51 = tpu.matmul %48, %50, %cst_19 {dimension_numbers = #tpu.dot_dimension_numbers<[1], [0], [0], [1], [0, 0, 1, 1], [], []>} : vector<12x384xf32>, vector<384x128xf32>, vector<12x128xf32> -> vector<12x128xf32>
    %c0_20 = arith.constant 0 : index
    %c0_21 = arith.constant 0 : index
    %c0_22 = arith.constant 0 : index
    %52 = vector.load %arg7[%c0_20, %c0_21, %c0_22] : memref<2x1x128xf32, #tpu.memory_space<vmem>>, vector<1x1x128xf32>
    %53 = vector.shape_cast %52 : vector<1x1x128xf32> to vector<1x128xf32>
    %54 = vector.broadcast %53 : vector<1x128xf32> to vector<12x128xf32>
    %55 = arith.addf %51, %54 : vector<12x128xf32>
    %cst_23 = arith.constant 0.000000e+00 : f32
    %56 = vector.broadcast %cst_23 : f32 to vector<12x128xf32>
    %57 = arith.maximumf %55, %56 : vector<12x128xf32>
    %58 = arith.addf %12, %57 : vector<12x128xf32>
    %cst_24 = arith.constant 0.000000e+00 : f32
    %59 = vector.broadcast %cst_24 : f32 to vector<1x128xf32>
    %60 = vector.extract_strided_slice %58 {offsets = [0, 0], sizes = [11, 128], strides = [1, 1]} : vector<12x128xf32> to vector<11x128xf32>
    %61 = tpu.concatenate %59, %60 in 0 : vector<1x128xf32>, vector<11x128xf32> -> vector<12x128xf32>
    %62 = vector.broadcast %33 : vector<12x1xf32> to vector<12x128xf32>
    %63 = arith.mulf %61, %62 : vector<12x128xf32>
    %cst_25 = arith.constant 0.000000e+00 : f32
    %64 = vector.broadcast %cst_25 : f32 to vector<1x128xf32>
    %65 = vector.extract_strided_slice %58 {offsets = [1, 0], sizes = [11, 128], strides = [1, 1]} : vector<12x128xf32> to vector<11x128xf32>
    %66 = tpu.concatenate %65, %64 in 0 : vector<11x128xf32>, vector<1x128xf32> -> vector<12x128xf32>
    %67 = vector.broadcast %37 : vector<12x1xf32> to vector<12x128xf32>
    %68 = arith.mulf %66, %67 : vector<12x128xf32>
    %69 = tpu.concatenate %63, %58, %68 in 1 : vector<12x128xf32>, vector<12x128xf32>, vector<12x128xf32> -> vector<12x384xf32>
    %c1 = arith.constant 1 : index
    %c0_26 = arith.constant 0 : index
    %c0_27 = arith.constant 0 : index
    %70 = vector.load %arg6[%c1, %c0_26, %c0_27] : memref<2x384x128xf32, #tpu.memory_space<vmem>>, vector<1x384x128xf32>
    %71 = vector.shape_cast %70 : vector<1x384x128xf32> to vector<384x128xf32>
    %cst_28 = arith.constant dense<0.000000e+00> : vector<12x128xf32>
    %72 = tpu.matmul %69, %71, %cst_28 {dimension_numbers = #tpu.dot_dimension_numbers<[1], [0], [0], [1], [0, 0, 1, 1], [], []>} : vector<12x384xf32>, vector<384x128xf32>, vector<12x128xf32> -> vector<12x128xf32>
    %c1_29 = arith.constant 1 : index
    %c0_30 = arith.constant 0 : index
    %c0_31 = arith.constant 0 : index
    %73 = vector.load %arg7[%c1_29, %c0_30, %c0_31] : memref<2x1x128xf32, #tpu.memory_space<vmem>>, vector<1x1x128xf32>
    %74 = vector.shape_cast %73 : vector<1x1x128xf32> to vector<1x128xf32>
    %75 = vector.broadcast %74 : vector<1x128xf32> to vector<12x128xf32>
    %76 = arith.addf %72, %75 : vector<12x128xf32>
    %cst_32 = arith.constant 0.000000e+00 : f32
    %77 = vector.broadcast %cst_32 : f32 to vector<12x128xf32>
    %78 = arith.maximumf %76, %77 : vector<12x128xf32>
    %79 = arith.addf %58, %78 : vector<12x128xf32>
    %c0_33 = arith.constant 0 : index
    %c0_34 = arith.constant 0 : index
    %80 = vector.load %arg8[%c0_33, %c0_34] : memref<12x128xf32, #tpu.memory_space<vmem>>, vector<12x128xf32>
    tpu.vector_store %arg8[%c0_33, %c0_34], %79 {strides = array<i32>} : memref<12x128xf32, #tpu.memory_space<vmem>>, vector<12x128xf32>,
    %c0_i32_35 = arith.constant 0 : i32
    %81 = arith.cmpi eq, %arg0, %c0_i32_35 : i32
    %82 = arith.extui %81 : i1 to i32
    %c0_i32_36 = arith.constant 0 : i32
    %83 = arith.cmpi ne, %82, %c0_i32_36 : i32
    scf.if %83 {
      %cst_44 = arith.constant 0.000000e+00 : f32
      %89 = vector.broadcast %cst_44 : f32 to vector<16x128xf32>
      %c0_45 = arith.constant 0 : index
      %c0_46 = arith.constant 0 : index
      %90 = vector.load %arg9[%c0_45, %c0_46] : memref<16x128xf32, #tpu.memory_space<vmem>>, vector<16x128xf32>
      tpu.vector_store %arg9[%c0_45, %c0_46], %89 {strides = array<i32>} : memref<16x128xf32, #tpu.memory_space<vmem>>, vector<16x128xf32>,
    } else {
    }
    %c0_37 = arith.constant 0 : index
    %c0_38 = arith.constant 0 : index
    %84 = vector.load %arg9[%c0_37, %c0_38] : memref<16x128xf32, #tpu.memory_space<vmem>>, vector<16x128xf32>
    %c0_39 = arith.constant 0 : index
    %c0_40 = arith.constant 0 : index
    %85 = vector.load %arg1[%c0_39, %c0_40] : memref<12x16xf32, #tpu.memory_space<vmem>>, vector<12x16xf32>
    %cst_41 = arith.constant dense<0.000000e+00> : vector<16x128xf32>
    %86 = tpu.matmul %85, %79, %cst_41 {dimension_numbers = #tpu.dot_dimension_numbers<[0], [0], [1], [1], [0, 1, 1, 1], [], []>} : vector<12x16xf32>, vector<12x128xf32>, vector<16x128xf32> -> vector<16x128xf32>
    %87 = arith.addf %84, %86 : vector<16x128xf32>
    %c0_42 = arith.constant 0 : index
    %c0_43 = arith.constant 0 : index
    %88 = vector.load %arg9[%c0_42, %c0_43] : memref<16x128xf32, #tpu.memory_space<vmem>>, vector<16x128xf32>
    tpu.vector_store %arg9[%c0_42, %c0_43], %87 {strides = array<i32>} : memref<16x128xf32, #tpu.memory_space<vmem>>, vector<16x128xf32>,
    return
  }
  func.func @transform_0(%arg0: i32) -> (i32, i32) {
    %c0_i32 = arith.constant 0 : i32
    %c0_i32_0 = arith.constant 0 : i32
    return %arg0, %c0_i32 : i32, i32
  }
  func.func @transform_1(%arg0: i32) -> (i32, i32) {
    %c0_i32 = arith.constant 0 : i32
    %c0_i32_0 = arith.constant 0 : i32
    return %arg0, %c0_i32 : i32, i32
  }
  func.func @transform_2(%arg0: i32) -> (i32, i32) {
    %c0_i32 = arith.constant 0 : i32
    %c0_i32_0 = arith.constant 0 : i32
    %c0_i32_1 = arith.constant 0 : i32
    return %c0_i32, %c0_i32_0 : i32, i32
  }
  func.func @transform_3(%arg0: i32) -> (i32, i32) {
    %c0_i32 = arith.constant 0 : i32
    %c0_i32_0 = arith.constant 0 : i32
    %c0_i32_1 = arith.constant 0 : i32
    return %c0_i32, %c0_i32_0 : i32, i32
  }
  func.func @transform_4(%arg0: i32) -> (i32, i32) {
    %c0_i32 = arith.constant 0 : i32
    %c0_i32_0 = arith.constant 0 : i32
    return %arg0, %c0_i32 : i32, i32
  }
  func.func @transform_5(%arg0: i32) -> (i32, i32, i32) {
    %c0_i32 = arith.constant 0 : i32
    %c0_i32_0 = arith.constant 0 : i32
    %c0_i32_1 = arith.constant 0 : i32
    %c0_i32_2 = arith.constant 0 : i32
    return %c0_i32, %c0_i32_0, %c0_i32_1 : i32, i32, i32
  }
  func.func @transform_6(%arg0: i32) -> (i32, i32, i32) {
    %c0_i32 = arith.constant 0 : i32
    %c0_i32_0 = arith.constant 0 : i32
    %c0_i32_1 = arith.constant 0 : i32
    %c0_i32_2 = arith.constant 0 : i32
    return %c0_i32, %c0_i32_0, %c0_i32_1 : i32, i32, i32
  }
  func.func @transform_7(%arg0: i32) -> (i32, i32) {
    %c0_i32 = arith.constant 0 : i32
    %c0_i32_0 = arith.constant 0 : i32
    return %arg0, %c0_i32 : i32, i32
  }
  func.func @transform_8(%arg0: i32) -> (i32, i32) {
    %c0_i32 = arith.constant 0 : i32
    %c0_i32_0 = arith.constant 0 : i32
    %c0_i32_1 = arith.constant 0 : i32
    return %c0_i32, %c0_i32_0 : i32, i32
  }
}

module attributes {stable_mosaic.version = 11 : i64} {
  func.func @_path_key_kernel(%arg0: i32, %arg1: memref<12x16xf32, #tpu.memory_space<vmem>>, %arg2: memref<12x1xf32, #tpu.memory_space<vmem>>, %arg3: memref<16x128xf32, #tpu.memory_space<vmem>>, %arg4: memref<1x128xf32, #tpu.memory_space<vmem>>, %arg5: memref<12x128xf32, #tpu.memory_space<vmem>>, %arg6: memref<2x384x128xf32, #tpu.memory_space<vmem>>, %arg7: memref<2x1x128xf32, #tpu.memory_space<vmem>>, %arg8: memref<12x128xf32, #tpu.memory_space<vmem>>, %arg9: memref<16x128xf32, #tpu.memory_space<vmem>>) attributes {dimension_semantics = [#tpu.dimension_semantics<arbitrary>], iteration_bounds = array<i64: 1>, scalar_prefetch = 0 : i64, scratch_operands = 0 : i64, tpu.core_type = #tpu.core_type<tc>, window_params = [{transform_indices = @transform_0, window_bounds = array<i64: 12, 16>}, {transform_indices = @transform_1, window_bounds = array<i64: 12, 1>}, {pipeline_mode = #tpu.pipeline_mode<synchronous>, transform_indices = @transform_2, window_bounds = array<i64: 16, 128>}, {pipeline_mode = #tpu.pipeline_mode<synchronous>, transform_indices = @transform_3, window_bounds = array<i64: 1, 128>}, {transform_indices = @transform_4, window_bounds = array<i64: 12, 128>}, {pipeline_mode = #tpu.pipeline_mode<synchronous>, transform_indices = @transform_5, window_bounds = array<i64: 2, 384, 128>}, {pipeline_mode = #tpu.pipeline_mode<synchronous>, transform_indices = @transform_6, window_bounds = array<i64: 2, 1, 128>}, {transform_indices = @transform_7, window_bounds = array<i64: 12, 128>}, {pipeline_mode = #tpu.pipeline_mode<synchronous>, transform_indices = @transform_8, window_bounds = array<i64: 16, 128>}]} {
    %c0 = arith.constant 0 : index
    %c0_0 = arith.constant 0 : index
    %0 = vector.load %arg1[%c0, %c0_0] : memref<12x16xf32, #tpu.memory_space<vmem>>, vector<12x16xf32>
    %c0_1 = arith.constant 0 : index
    %c0_2 = arith.constant 0 : index
    %1 = vector.load %arg3[%c0_1, %c0_2] : memref<16x128xf32, #tpu.memory_space<vmem>>, vector<16x128xf32>
    %cst = arith.constant dense<0.000000e+00> : vector<12x128xf32>
    %2 = tpu.matmul %0, %1, %cst {dimension_numbers = #tpu.dot_dimension_numbers<[1], [0], [0], [1], [0, 0, 1, 1], [], []>} : vector<12x16xf32>, vector<16x128xf32>, vector<12x128xf32> -> vector<12x128xf32>
    %c0_3 = arith.constant 0 : index
    %c0_4 = arith.constant 0 : index
    %3 = vector.load %arg2[%c0_3, %c0_4] : memref<12x1xf32, #tpu.memory_space<vmem>>, vector<12x1xf32>
    %4 = vector.broadcast %3 : vector<12x1xf32> to vector<12x128xf32>
    %5 = arith.mulf %2, %4 : vector<12x128xf32>
    %c0_5 = arith.constant 0 : index
    %c0_6 = arith.constant 0 : index
    %6 = vector.load %arg4[%c0_5, %c0_6] : memref<1x128xf32, #tpu.memory_space<vmem>>, vector<1x128xf32>
    %7 = vector.broadcast %6 : vector<1x128xf32> to vector<12x128xf32>
    %8 = arith.addf %5, %7 : vector<12x128xf32>
    %c0_7 = arith.constant 0 : index
    %c0_8 = arith.constant 0 : index
    %9 = vector.load %arg5[%c0_7, %c0_8] : memref<12x128xf32, #tpu.memory_space<vmem>>, vector<12x128xf32>
    %cst_9 = arith.constant 0.000000e+00 : f32
    %10 = vector.broadcast %cst_9 : f32 to vector<12x128xf32>
    %11 = arith.maximumf %8, %10 : vector<12x128xf32>
    %12 = arith.addf %9, %11 : vector<12x128xf32>
    %13 = tpu.iota {dimensions = array<i32: 0>} : vector<12x1xi32>
    %c4_i32 = arith.constant 4 : i32
    %c0_i32 = arith.constant 0 : i32
    %14 = arith.cmpi eq, %c4_i32, %c0_i32 : i32
    %c1_i32 = arith.constant 1 : i32
    %15 = arith.select %14, %c1_i32, %c4_i32 : i32
    %16 = vector.broadcast %15 : i32 to vector<12x1xi32>
    %17 = arith.remsi %13, %16 : vector<12x1xi32>
    %c0_i32_10 = arith.constant 0 : i32
    %18 = vector.broadcast %c0_i32_10 : i32 to vector<12x1xi32>
    %19 = arith.cmpi ne, %17, %18 : vector<12x1xi32>
    %c0_i32_11 = arith.constant 0 : i32
    %20 = vector.broadcast %c0_i32_11 : i32 to vector<12x1xi32>
    %21 = arith.cmpi slt, %17, %20 : vector<12x1xi32>
    %c0_i32_12 = arith.constant 0 : i32
    %22 = arith.cmpi slt, %15, %c0_i32_12 : i32
    %23 = vector.broadcast %22 : i1 to vector<12x1xi1>
    %24 = vector.broadcast %23 : vector<12x1xi1> to vector<12x1xi1>
    %25 = arith.xori %21, %24 : vector<12x1xi1>
    %26 = arith.andi %25, %19 : vector<12x1xi1>
    %27 = vector.broadcast %15 : i32 to vector<12x1xi32>
    %28 = arith.addi %17, %27 : vector<12x1xi32>
    %29 = arith.select %26, %28, %17 : vector<12x1xi1>, vector<12x1xi32>
    %c0_i32_13 = arith.constant 0 : i32
    %30 = vector.broadcast %c0_i32_13 : i32 to vector<12x1xi32>
    %31 = arith.cmpi ne, %29, %30 : vector<12x1xi32>
    %32 = arith.extui %31 : vector<12x1xi1> to vector<12x1xi32>
    %33 = arith.sitofp %32 : vector<12x1xi32> to vector<12x1xf32>
    %c3_i32 = arith.constant 3 : i32
    %34 = vector.broadcast %c3_i32 : i32 to vector<12x1xi32>
    %35 = arith.cmpi ne, %29, %34 : vector<12x1xi32>
    %36 = arith.extui %35 : vector<12x1xi1> to vector<12x1xi32>
    %37 = arith.sitofp %36 : vector<12x1xi32> to vector<12x1xf32>
    %cst_14 = arith.constant 0.000000e+00 : f32
    %38 = vector.broadcast %cst_14 : f32 to vector<1x128xf32>
    %39 = vector.extract_strided_slice %12 {offsets = [0, 0], sizes = [11, 128], strides = [1, 1]} : vector<12x128xf32> to vector<11x128xf32>
    %40 = tpu.concatenate %38, %39 in 0 : vector<1x128xf32>, vector<11x128xf32> -> vector<12x128xf32>
    %41 = vector.broadcast %33 : vector<12x1xf32> to vector<12x128xf32>
    %42 = arith.mulf %40, %41 : vector<12x128xf32>
    %cst_15 = arith.constant 0.000000e+00 : f32
    %43 = vector.broadcast %cst_15 : f32 to vector<1x128xf32>
    %44 = vector.extract_strided_slice %12 {offsets = [1, 0], sizes = [11, 128], strides = [1, 1]} : vector<12x128xf32> to vector<11x128xf32>
    %45 = tpu.concatenate %44, %43 in 0 : vector<11x128xf32>, vector<1x128xf32> -> vector<12x128xf32>
    %46 = vector.broadcast %37 : vector<12x1xf32> to vector<12x128xf32>
    %47 = arith.mulf %45, %46 : vector<12x128xf32>
    %48 = tpu.concatenate %42, %12, %47 in 1 : vector<12x128xf32>, vector<12x128xf32>, vector<12x128xf32> -> vector<12x384xf32>
    %c0_16 = arith.constant 0 : index
    %c0_17 = arith.constant 0 : index
    %c0_18 = arith.constant 0 : index
    %49 = vector.load %arg6[%c0_16, %c0_17, %c0_18] : memref<2x384x128xf32, #tpu.memory_space<vmem>>, vector<1x384x128xf32>
    %50 = vector.shape_cast %49 : vector<1x384x128xf32> to vector<384x128xf32>
    %cst_19 = arith.constant dense<0.000000e+00> : vector<12x128xf32>
    %51 = tpu.matmul %48, %50, %cst_19 {dimension_numbers = #tpu.dot_dimension_numbers<[1], [0], [0], [1], [0, 0, 1, 1], [], []>} : vector<12x384xf32>, vector<384x128xf32>, vector<12x128xf32> -> vector<12x128xf32>
    %c0_20 = arith.constant 0 : index
    %c0_21 = arith.constant 0 : index
    %c0_22 = arith.constant 0 : index
    %52 = vector.load %arg7[%c0_20, %c0_21, %c0_22] : memref<2x1x128xf32, #tpu.memory_space<vmem>>, vector<1x1x128xf32>
    %53 = vector.shape_cast %52 : vector<1x1x128xf32> to vector<1x128xf32>
    %54 = vector.broadcast %53 : vector<1x128xf32> to vector<12x128xf32>
    %55 = arith.addf %51, %54 : vector<12x128xf32>
    %cst_23 = arith.constant 0.000000e+00 : f32
    %56 = vector.broadcast %cst_23 : f32 to vector<12x128xf32>
    %57 = arith.maximumf %55, %56 : vector<12x128xf32>
    %58 = arith.addf %12, %57 : vector<12x128xf32>
    %cst_24 = arith.constant 0.000000e+00 : f32
    %59 = vector.broadcast %cst_24 : f32 to vector<1x128xf32>
    %60 = vector.extract_strided_slice %58 {offsets = [0, 0], sizes = [11, 128], strides = [1, 1]} : vector<12x128xf32> to vector<11x128xf32>
    %61 = tpu.concatenate %59, %60 in 0 : vector<1x128xf32>, vector<11x128xf32> -> vector<12x128xf32>
    %62 = vector.broadcast %33 : vector<12x1xf32> to vector<12x128xf32>
    %63 = arith.mulf %61, %62 : vector<12x128xf32>
    %cst_25 = arith.constant 0.000000e+00 : f32
    %64 = vector.broadcast %cst_25 : f32 to vector<1x128xf32>
    %65 = vector.extract_strided_slice %58 {offsets = [1, 0], sizes = [11, 128], strides = [1, 1]} : vector<12x128xf32> to vector<11x128xf32>
    %66 = tpu.concatenate %65, %64 in 0 : vector<11x128xf32>, vector<1x128xf32> -> vector<12x128xf32>
    %67 = vector.broadcast %37 : vector<12x1xf32> to vector<12x128xf32>
    %68 = arith.mulf %66, %67 : vector<12x128xf32>
    %69 = tpu.concatenate %63, %58, %68 in 1 : vector<12x128xf32>, vector<12x128xf32>, vector<12x128xf32> -> vector<12x384xf32>
    %c1 = arith.constant 1 : index
    %c0_26 = arith.constant 0 : index
    %c0_27 = arith.constant 0 : index
    %70 = vector.load %arg6[%c1, %c0_26, %c0_27] : memref<2x384x128xf32, #tpu.memory_space<vmem>>, vector<1x384x128xf32>
    %71 = vector.shape_cast %70 : vector<1x384x128xf32> to vector<384x128xf32>
    %cst_28 = arith.constant dense<0.000000e+00> : vector<12x128xf32>
    %72 = tpu.matmul %69, %71, %cst_28 {dimension_numbers = #tpu.dot_dimension_numbers<[1], [0], [0], [1], [0, 0, 1, 1], [], []>} : vector<12x384xf32>, vector<384x128xf32>, vector<12x128xf32> -> vector<12x128xf32>
    %c1_29 = arith.constant 1 : index
    %c0_30 = arith.constant 0 : index
    %c0_31 = arith.constant 0 : index
    %73 = vector.load %arg7[%c1_29, %c0_30, %c0_31] : memref<2x1x128xf32, #tpu.memory_space<vmem>>, vector<1x1x128xf32>
    %74 = vector.shape_cast %73 : vector<1x1x128xf32> to vector<1x128xf32>
    %75 = vector.broadcast %74 : vector<1x128xf32> to vector<12x128xf32>
    %76 = arith.addf %72, %75 : vector<12x128xf32>
    %cst_32 = arith.constant 0.000000e+00 : f32
    %77 = vector.broadcast %cst_32 : f32 to vector<12x128xf32>
    %78 = arith.maximumf %76, %77 : vector<12x128xf32>
    %79 = arith.addf %58, %78 : vector<12x128xf32>
    %c0_33 = arith.constant 0 : index
    %c0_34 = arith.constant 0 : index
    %80 = vector.load %arg8[%c0_33, %c0_34] : memref<12x128xf32, #tpu.memory_space<vmem>>, vector<12x128xf32>
    tpu.vector_store %arg8[%c0_33, %c0_34], %79 {strides = array<i32>} : memref<12x128xf32, #tpu.memory_space<vmem>>, vector<12x128xf32>,
    %c0_i32_35 = arith.constant 0 : i32
    %81 = arith.cmpi eq, %arg0, %c0_i32_35 : i32
    %82 = arith.extui %81 : i1 to i32
    %c0_i32_36 = arith.constant 0 : i32
    %83 = arith.cmpi ne, %82, %c0_i32_36 : i32
    scf.if %83 {
      %cst_44 = arith.constant 0.000000e+00 : f32
      %89 = vector.broadcast %cst_44 : f32 to vector<16x128xf32>
      %c0_45 = arith.constant 0 : index
      %c0_46 = arith.constant 0 : index
      %90 = vector.load %arg9[%c0_45, %c0_46] : memref<16x128xf32, #tpu.memory_space<vmem>>, vector<16x128xf32>
      tpu.vector_store %arg9[%c0_45, %c0_46], %89 {strides = array<i32>} : memref<16x128xf32, #tpu.memory_space<vmem>>, vector<16x128xf32>,
    } else {
    }
    %c0_37 = arith.constant 0 : index
    %c0_38 = arith.constant 0 : index
    %84 = vector.load %arg9[%c0_37, %c0_38] : memref<16x128xf32, #tpu.memory_space<vmem>>, vector<16x128xf32>
    %c0_39 = arith.constant 0 : index
    %c0_40 = arith.constant 0 : index
    %85 = vector.load %arg1[%c0_39, %c0_40] : memref<12x16xf32, #tpu.memory_space<vmem>>, vector<12x16xf32>
    %cst_41 = arith.constant dense<0.000000e+00> : vector<16x128xf32>
    %86 = tpu.matmul %85, %79, %cst_41 {dimension_numbers = #tpu.dot_dimension_numbers<[0], [0], [1], [1], [0, 1, 1, 1], [], []>} : vector<12x16xf32>, vector<12x128xf32>, vector<16x128xf32> -> vector<16x128xf32>
    %87 = arith.addf %84, %86 : vector<16x128xf32>
    %c0_42 = arith.constant 0 : index
    %c0_43 = arith.constant 0 : index
    %88 = vector.load %arg9[%c0_42, %c0_43] : memref<16x128xf32, #tpu.memory_space<vmem>>, vector<16x128xf32>
    tpu.vector_store %arg9[%c0_42, %c0_43], %87 {strides = array<i32>} : memref<16x128xf32, #tpu.memory_space<vmem>>, vector<16x128xf32>,
    return
  }
  func.func @transform_0(%arg0: i32) -> (i32, i32) {
    %c0_i32 = arith.constant 0 : i32
    %c0_i32_0 = arith.constant 0 : i32
    return %arg0, %c0_i32 : i32, i32
  }
  func.func @transform_1(%arg0: i32) -> (i32, i32) {
    %c0_i32 = arith.constant 0 : i32
    %c0_i32_0 = arith.constant 0 : i32
    return %arg0, %c0_i32 : i32, i32
  }
  func.func @transform_2(%arg0: i32) -> (i32, i32) {
    %c0_i32 = arith.constant 0 : i32
    %c0_i32_0 = arith.constant 0 : i32
    %c0_i32_1 = arith.constant 0 : i32
    return %c0_i32, %c0_i32_0 : i32, i32
  }
  func.func @transform_3(%arg0: i32) -> (i32, i32) {
    %c0_i32 = arith.constant 0 : i32
    %c0_i32_0 = arith.constant 0 : i32
    %c0_i32_1 = arith.constant 0 : i32
    return %c0_i32, %c0_i32_0 : i32, i32
  }
  func.func @transform_4(%arg0: i32) -> (i32, i32) {
    %c0_i32 = arith.constant 0 : i32
    %c0_i32_0 = arith.constant 0 : i32
    return %arg0, %c0_i32 : i32, i32
  }
  func.func @transform_5(%arg0: i32) -> (i32, i32, i32) {
    %c0_i32 = arith.constant 0 : i32
    %c0_i32_0 = arith.constant 0 : i32
    %c0_i32_1 = arith.constant 0 : i32
    %c0_i32_2 = arith.constant 0 : i32
    return %c0_i32, %c0_i32_0, %c0_i32_1 : i32, i32, i32
  }
  func.func @transform_6(%arg0: i32) -> (i32, i32, i32) {
    %c0_i32 = arith.constant 0 : i32
    %c0_i32_0 = arith.constant 0 : i32
    %c0_i32_1 = arith.constant 0 : i32
    %c0_i32_2 = arith.constant 0 : i32
    return %c0_i32, %c0_i32_0, %c0_i32_1 : i32, i32, i32
  }
  func.func @transform_7(%arg0: i32) -> (i32, i32) {
    %c0_i32 = arith.constant 0 : i32
    %c0_i32_0 = arith.constant 0 : i32
    return %arg0, %c0_i32 : i32, i32
  }
  func.func @transform_8(%arg0: i32) -> (i32, i32) {
    %c0_i32 = arith.constant 0 : i32
    %c0_i32_0 = arith.constant 0 : i32
    %c0_i32_1 = arith.constant 0 : i32
    return %c0_i32, %c0_i32_0 : i32, i32
  }
}

module attributes {stable_mosaic.version = 11 : i64} {
  func.func @_mix_into_atoms_kernel(%arg0: i32, %arg1: memref<16x128xf32, #tpu.memory_space<vmem>>, %arg2: memref<1x16x128xf32, #tpu.memory_space<vmem>>, %arg3: memref<1x16x1xf32, #tpu.memory_space<vmem>>, %arg4: memref<1x128x128xf32, #tpu.memory_space<vmem>>, %arg5: memref<1x1x128xf32, #tpu.memory_space<vmem>>, %arg6: memref<16x128xf32, #tpu.memory_space<vmem>>) attributes {dimension_semantics = [#tpu.dimension_semantics<arbitrary>], iteration_bounds = array<i64: 2>, scalar_prefetch = 0 : i64, scratch_operands = 0 : i64, tpu.core_type = #tpu.core_type<tc>, window_params = [{pipeline_mode = #tpu.pipeline_mode<synchronous>, transform_indices = @transform_0, window_bounds = array<i64: 16, 128>}, {transform_indices = @transform_1, window_bounds = array<i64: 1, 16, 128>}, {transform_indices = @transform_2, window_bounds = array<i64: 1, 16, 1>}, {transform_indices = @transform_3, window_bounds = array<i64: 1, 128, 128>}, {transform_indices = @transform_4, window_bounds = array<i64: 1, 1, 128>}, {pipeline_mode = #tpu.pipeline_mode<synchronous>, transform_indices = @transform_5, window_bounds = array<i64: 16, 128>}]} {
    %c0_i32 = arith.constant 0 : i32
    %0 = arith.cmpi eq, %arg0, %c0_i32 : i32
    %1 = arith.extui %0 : i1 to i32
    %c0_i32_0 = arith.constant 0 : i32
    %2 = arith.cmpi ne, %1, %c0_i32_0 : i32
    scf.if %2 {
      %c0_17 = arith.constant 0 : index
      %c0_18 = arith.constant 0 : index
      %21 = vector.load %arg1[%c0_17, %c0_18] : memref<16x128xf32, #tpu.memory_space<vmem>>, vector<16x128xf32>
      %c0_19 = arith.constant 0 : index
      %c0_20 = arith.constant 0 : index
      %22 = vector.load %arg6[%c0_19, %c0_20] : memref<16x128xf32, #tpu.memory_space<vmem>>, vector<16x128xf32>
      tpu.vector_store %arg6[%c0_19, %c0_20], %21 {strides = array<i32>} : memref<16x128xf32, #tpu.memory_space<vmem>>, vector<16x128xf32>,
    } else {
    }
    %c0 = arith.constant 0 : index
    %c0_1 = arith.constant 0 : index
    %c0_2 = arith.constant 0 : index
    %3 = vector.load %arg2[%c0, %c0_1, %c0_2] : memref<1x16x128xf32, #tpu.memory_space<vmem>>, vector<1x16x128xf32>
    %4 = vector.shape_cast %3 : vector<1x16x128xf32> to vector<16x128xf32>
    %c0_3 = arith.constant 0 : index
    %c0_4 = arith.constant 0 : index
    %c0_5 = arith.constant 0 : index
    %5 = vector.load %arg3[%c0_3, %c0_4, %c0_5] : memref<1x16x1xf32, #tpu.memory_space<vmem>>, vector<1x16x1xf32>
    %6 = vector.shape_cast %5 : vector<1x16x1xf32> to vector<16x1xf32>
    %7 = vector.broadcast %6 : vector<16x1xf32> to vector<16x128xf32>
    %8 = arith.mulf %4, %7 : vector<16x128xf32>
    %c0_6 = arith.constant 0 : index
    %c0_7 = arith.constant 0 : index
    %c0_8 = arith.constant 0 : index
    %9 = vector.load %arg4[%c0_6, %c0_7, %c0_8] : memref<1x128x128xf32, #tpu.memory_space<vmem>>, vector<1x128x128xf32>
    %10 = vector.shape_cast %9 : vector<1x128x128xf32> to vector<128x128xf32>
    %cst = arith.constant dense<0.000000e+00> : vector<16x128xf32>
    %11 = tpu.matmul %8, %10, %cst {dimension_numbers = #tpu.dot_dimension_numbers<[1], [0], [0], [1], [0, 0, 1, 1], [], []>} : vector<16x128xf32>, vector<128x128xf32>, vector<16x128xf32> -> vector<16x128xf32>
    %c0_9 = arith.constant 0 : index
    %c0_10 = arith.constant 0 : index
    %c0_11 = arith.constant 0 : index
    %12 = vector.load %arg5[%c0_9, %c0_10, %c0_11] : memref<1x1x128xf32, #tpu.memory_space<vmem>>, vector<1x1x128xf32>
    %13 = vector.shape_cast %12 : vector<1x1x128xf32> to vector<1x128xf32>
    %14 = vector.broadcast %13 : vector<1x128xf32> to vector<16x128xf32>
    %15 = arith.addf %11, %14 : vector<16x128xf32>
    %c0_12 = arith.constant 0 : index
    %c0_13 = arith.constant 0 : index
    %16 = vector.load %arg6[%c0_12, %c0_13] : memref<16x128xf32, #tpu.memory_space<vmem>>, vector<16x128xf32>
    %cst_14 = arith.constant 0.000000e+00 : f32
    %17 = vector.broadcast %cst_14 : f32 to vector<16x128xf32>
    %18 = arith.maximumf %15, %17 : vector<16x128xf32>
    %19 = arith.addf %16, %18 : vector<16x128xf32>
    %c0_15 = arith.constant 0 : index
    %c0_16 = arith.constant 0 : index
    %20 = vector.load %arg6[%c0_15, %c0_16] : memref<16x128xf32, #tpu.memory_space<vmem>>, vector<16x128xf32>
    tpu.vector_store %arg6[%c0_15, %c0_16], %19 {strides = array<i32>} : memref<16x128xf32, #tpu.memory_space<vmem>>, vector<16x128xf32>,
    return
  }
  func.func @transform_0(%arg0: i32) -> (i32, i32) {
    %c0_i32 = arith.constant 0 : i32
    %c0_i32_0 = arith.constant 0 : i32
    %c0_i32_1 = arith.constant 0 : i32
    return %c0_i32, %c0_i32_0 : i32, i32
  }
  func.func @transform_1(%arg0: i32) -> (i32, i32, i32) {
    %c0_i32 = arith.constant 0 : i32
    %c0_i32_0 = arith.constant 0 : i32
    %c0_i32_1 = arith.constant 0 : i32
    return %arg0, %c0_i32, %c0_i32_0 : i32, i32, i32
  }
  func.func @transform_2(%arg0: i32) -> (i32, i32, i32) {
    %c0_i32 = arith.constant 0 : i32
    %c0_i32_0 = arith.constant 0 : i32
    %c0_i32_1 = arith.constant 0 : i32
    return %arg0, %c0_i32, %c0_i32_0 : i32, i32, i32
  }
  func.func @transform_3(%arg0: i32) -> (i32, i32, i32) {
    %c0_i32 = arith.constant 0 : i32
    %c0_i32_0 = arith.constant 0 : i32
    %c0_i32_1 = arith.constant 0 : i32
    return %arg0, %c0_i32, %c0_i32_0 : i32, i32, i32
  }
  func.func @transform_4(%arg0: i32) -> (i32, i32, i32) {
    %c0_i32 = arith.constant 0 : i32
    %c0_i32_0 = arith.constant 0 : i32
    %c0_i32_1 = arith.constant 0 : i32
    return %arg0, %c0_i32, %c0_i32_0 : i32, i32, i32
  }
  func.func @transform_5(%arg0: i32) -> (i32, i32) {
    %c0_i32 = arith.constant 0 : i32
    %c0_i32_0 = arith.constant 0 : i32
    %c0_i32_1 = arith.constant 0 : i32
    return %c0_i32, %c0_i32_0 : i32, i32
  }
}

</mosaic_0001>

<bundles_post_ra>
// kernel: path_convolution_forward.5
= control target key start
LH: loop header
LB: loop body
LE: loop exit
PB: predicated region body
PF: predicated region fallthrough
CT: control target
= control target key end

     0   :  { %10 = vsyncpa [#allocation3], 0  ;;  %s671_s18 = smov 0   ;;  %s760_s0 = inlined_call_operand.vmem [shape: f32[16,128], index: 0, kind: input, shape index: {}]   ;;  %s761_s1 = inlined_call_operand.vmem [shape: f32[2,16,128], index: 1, kind: input, shape index: {}]   ;;  %s762_s2 = inlined_call_operand.vmem [shape: f32[2,16,1], index: 2, kind: input, shape index: {}]   ;;  %s763_s3 = inlined_call_operand.vmem [shape: f32[2,128,128], index: 3, kind: input, shape index: {}]   ;;  %s764_s4 = inlined_call_operand.vmem [shape: f32[2,1,128], index: 4, kind: input, shape index: {}]   ;;  %s765_s5 = inlined_call_operand.hbm [shape: f32[16,128], index: 5, kind: output, shape index: {}]  }
   0x1 LB: > { %s677_s19 = sadd.s32 4294967295, %s635_s18   ;;  %p479_p0 = scmp.ge.s32.totalorder %s635_s18, 1  ;;  %s635_s18 = sphi %s671_s18, %s16_s18  }
   0x2   : > { %p211_p1 = scmp.lt.s32.totalorder %s635_s18, 3 }
   0x4   : > { %p212_p2 = pnand %p479_p0, %p211_p1 }
   0x5   : > { %p247_p3 = scmp.lt.s32.totalorder (!%p212_p2), %s677_s19, 1  ;;  %p486_p4 = scmp.ne.s32.totalorder (!%p212_p2), %s677_s19, 0 }
   0x6   : > { %215 = sbr.rel (%p212_p2) target bundleno = 392 (0x188), region = 40 }
   0xd   : > { %s683_s20 = scalar_select %p247_p3, %s677_s19, 1 }
   0xe   : > { %268 = sbr.rel (%p486_p4) target bundleno = 21 (0x15), region = 44  ;;  %v269_v0 = vld [vmem:[%s760_s0] sm:$0xff] (!%p486_p4)  ;;  %v270_v1 = vld [vmem:[%s760_s0 + $0x8] sm:$0xff] (!%p486_p4) }
   0xf   : > { %s492_s21 = sshll.u32 %s683_s20, 4  ;;  %s494_s22 = sshll.u32 %s683_s20, 7  ;;  %271 = vst [vmem:[#allocation2] sm:$0xff] (!%p486_p4), %v269_v0  ;;  %272 = vst [vmem:[#allocation2 + $0x8] sm:$0xff] (!%p486_p4), %v270_v1 }
  0x10   : > { %s690_s25 = scalar_lea.vmem %s761_s1, %s492_s21  ;;  %s256_s28 = scalar_lea.vmem %s762_s2, %s492_s21 }
  0x11   : > { %s698_s6 = scalar_lea.vmem %s763_s3, %s494_s22  ;;  %s264_s9 = scalar_lea.vmem %s764_s4, %s683_s20 }
  0x15 PF: > { %v275_v2 = vld [vmem:[%s256_s28] sm:$0xff]  ;;  %v637_v4 = vmov 0   ;;  %v290_v5 = vld [vmem:[%s698_s6 + $0x8] sm:$0xff]  ;;  %v291_v6 = vld [vmem:[%s698_s6 + $0x10] sm:$0xff]  ;;  %s638_s16 = smov [#allocation2]   ;;  %p584_p5 = scmp.eq.s32.totalorder %s677_s19, 1 }
  0x16   : > { %v289_v3 = vld [vmem:[%s698_s6] sm:$0xff]  ;;  %598 = vset.pattern.permute.xlu0 %v637_v4  ;;  %v292_v7 = vld [vmem:[%s698_s6 + $0x18] sm:$0xff]  ;;  %v276_v10 = vld [vmem:[%s256_s28 + $0x8] sm:$0xff]  ;;  %s401_s17 = sshll.u32 %s638_s16, 4  ;;  %s402_s17 = int_to_ptr.vmem [resolvable:$true] %s401_s17 }
  0x17   : > { %279 = vperm.xlu0 %598, %v275_v2   ;;  %v548_v8 = vpack.c.bf16 %v290_v5, %v289_v3  ;;  %v552_v9 = vpack.c.bf16 %v292_v7, %v291_v6  ;;  %v293_v11 = vld [vmem:[%s698_s6 + $0x20] sm:$0xff]  ;;  %v294_v12 = vld [vmem:[%s698_s6 + $0x28] sm:$0xff]  ;;  %v295_v14 = vld [vmem:[%s698_s6 + $0x30] sm:$0xff]  ;;  %s599_s21 = scalar_lea.vmem %s402_s17, 256  ;;  %p606_p9 = scmp.lt.s32.totalorder %s402_s17, %s402_s17 }
  0x18   : > { %v556_v13 = vpack.c.bf16 %v294_v12, %v293_v11  ;;  %v296_v15 = vld [vmem:[%s698_s6 + $0x38] sm:$0xff]  ;;  %v297_v17 = vld [vmem:[%s698_s6 + $0x40] sm:$0xff]  ;;  %v298_v18 = vld [vmem:[%s698_s6 + $0x48] sm:$0xff]  ;;  %p600_p6 = scmp.ne.s32.totalorder %s402_s17, %s599_s21  ;;  %p607_p10 = scmp.lt.s32.totalorder %s599_s21, %s599_s21 }
  0x19   : > { %549 = vmatprep.subr.bf16.mxu0 %v548_v8  ;;  %v560_v16 = vpack.c.bf16 %v296_v15, %v295_v14  ;;  %v564_v19 = vpack.c.bf16 %v298_v18, %v297_v17  ;;  %v299_v20 = vld [vmem:[%s698_s6 + $0x50] sm:$0xff]  ;;  %v300_v21 = vld [vmem:[%s698_s6 + $0x58] sm:$0xff]  ;;  %v301_v23 = vld [vmem:[%s698_s6 + $0x60] sm:$0xff] }
  0x1a   : > { %551 = vmatpush3.bf16.msra.mxu0 %v548_v8  ;;  %v568_v22 = vpack.c.bf16 %v300_v21, %v299_v20  ;;  %v302_v24 = vld [vmem:[%s698_s6 + $0x68] sm:$0xff]  ;;  %v303_v26 = vld [vmem:[%s698_s6 + $0x70] sm:$0xff]  ;;  %v304_v27 = vld [vmem:[%s698_s6 + $0x78] sm:$0xff]  ;;  %p601_p7 = pnand %p600_p6, %p584_p5  ;;  %p608_p11 = por %p607_p10, %p606_p9 }
  0x1b   : > { %284 = vperm.xlu0 %598, %v276_v10   ;;  %553 = vmatprep.subr.bf16.mxu0 %v552_v9  ;;  %v572_v25 = vpack.c.bf16 %v302_v24, %v301_v23  ;;  %v576_v28 = vpack.c.bf16 %v304_v27, %v303_v26  ;;  %v273_v29 = vld [vmem:[%s690_s25] sm:$0xff]  ;;  %v274_v32 = vld [vmem:[%s690_s25 + $0x8] sm:$0xff] }
  0x1c   : > { %v487_v35 = vld [vmem:[%s264_s9] ss:$0 sm:$0xff]  ;;  %v388_v39 = vld [vmem:[#allocation2 + $0x8] sm:$0xff]  ;;  %p602_p8 = pneg %p601_p7 }
  0x1d   : > { %v387_v42 = vld [vmem:[#allocation2] sm:$0xff] }
  0x1e   : > { %555 = vmatpush3.bf16.msra.mxu0 %v552_v9  ;;  %p609_p12 = pnand %p608_p11, %p602_p8 }
  0x1f   : > { %557 = vmatprep.subr.bf16.mxu0 %v556_v13 }
  0x22   : > { %559 = vmatpush3.bf16.msra.mxu0 %v556_v13 }
  0x23   : > { %561 = vmatprep.subr.bf16.mxu0 %v560_v16 }
  0x26   : > { %563 = vmatpush3.bf16.msra.mxu0 %v560_v16 }
  0x27   : > { %565 = vmatprep.subr.bf16.mxu0 %v564_v19 }
  0x2a   : > { %567 = vmatpush3.bf16.msra.mxu0 %v564_v19 }
  0x2b   : > { %569 = vmatprep.subr.bf16.mxu0 %v568_v22 }
  0x2e   : > { %571 = vmatpush3.bf16.msra.mxu0 %v568_v22 }
  0x2f   : > { %573 = vmatprep.subr.bf16.mxu0 %v572_v25 }
  0x32   : > { %575 = vmatpush3.bf16.msra.mxu0 %v572_v25 }
  0x33   : > { %577 = vmatprep.subr.bf16.mxu0 %v576_v28 }
  0x36   : > { %579 = vmatpush3.bf16.msra.mxu0 %v576_v28 }
  0x96   : > { %v280_v30 = vpop.permute.xlu0 %279 }
  0x97   : > { %v287_v31 = vmul.f32 %v280_v30, %v273_v29 }
  0x99   : > { %545 = vmatprep.mubr.f32.mxu0 %v287_v31 }
  0x9a   : > { %v285_v33 = vpop.permute.xlu0 %284 }
  0x9b   : > { %v288_v34 = vmul.f32 %v285_v33, %v274_v32 }
  0x9d   : > { %546 = vmatmul.mubr.f32.vlgmr.msra.gmra.mrb[0].mxu0 %v288_v34 }
 0x170   : > { %v547_v36 = vpop.f32.mrb[0].mxu0 }
 0x171   : > { %v384_v37 = vadd.f32 %v547_v36, %v487_v35  ;;  %v378_v38 = vpop.f32.mrb[1].mxu0 }
 0x172   : > { %v379_v40 = vadd.f32 %v487_v35, %v378_v38 }
 0x173   : > { %v390_v41 = vmax.f32 %v384_v37, 0.0 }
 0x174   : > { %v389_v43 = vmax.f32 %v379_v40, 0.0 }
 0x175   : > { %v392_v44 = vadd.f32 %v390_v41, %v388_v39 }
 0x176   : > { %v391_v45 = vadd.f32 %v389_v43, %v387_v42 }
 0x177   : > { %394 = vst [vmem:[#allocation2 + $0x8] sm:$0xff] %v392_v44 }
 0x178   : > { %393 = vst [vmem:[#allocation2] sm:$0xff] %v391_v45 }
 0x179   : > { %612 = shalt.err (!%p609_p12)
}
 0x17a   : > { %s613_s23 = scalar_lea.hbm %s765_s5, 256 }
 0x17b   : > { %p614_p13 = scmp.ne.s32.totalorder %s765_s5, %s613_s23  ;;  %p619_p2 = scmp.lt.u32.totalorder %s613_s23, %s765_s5 }
 0x17d   : > { %p615_p0 = pnand %p614_p13, %p584_p5 }
 0x17f   : > { %p616_p1 = pneg %p615_p0 }
 0x181   : > { %p621_p3 = pnand %p619_p2, %p616_p1 }
 0x183   : > { %624 = shalt.err (!%p621_p3)
}
 0x184   : > { %s639_s28 = smov 128   ;;  %s640_s29 = smov 8  }
 0x185   : > { %581 = dma.vmem_to_hbm [thread:$0]  (%p584_p5), %s402_s17, 256, %s765_s5, [#allocation3], %s639_s28, %s639_s28, %s640_s29  }
 0x186   : > { %630 = dma.done.wait (%p584_p5), [#allocation3], 256  }
 0x187   : > { %632 = vsyncadd (%p584_p5), [#allocation3], 4294967040 }
 0x188 PF: > { %s16_s18 = sadd.s32 1, %s635_s18  }
 0x189   : > { %p13_p4 = scmp.ge.s32.totalorder %s16_s18, 4  }
 0x18b   :  { %15 = sbr.rel (!%p13_p4) target bundleno = 1 (0x1), region = 80 }
 0x192   :  { %417 = vsyncpa [#allocation3], 1 }
 0x193   :  { %419 = vsyncpa [#allocation3 + $0x1], 1 }

// kernel: path_convolution_forward.3
= control target key start
LH: loop header
LB: loop body
LE: loop exit
PB: predicated region body
PF: predicated region fallthrough
CT: control target
= control target key end

     0   :  { %vm33_vm0 = vcmask 130048   ;;  %v1230_v4 = vmov 0   ;;  %s1673_s0 = inlined_call_operand.vmem [shape: f32[12,16], index: 0, kind: input, shape index: {}]   ;;  %s1674_s1 = inlined_call_operand.vmem [shape: f32[12,1], index: 1, kind: input, shape index: {}]   ;;  %s1675_s2 = inlined_call_operand.vmem [shape: f32[16,128], index: 2, kind: input, shape index: {}]   ;;  %s1676_s3 = inlined_call_operand.vmem [shape: f32[1,128], index: 3, kind: input, shape index: {}]   ;;  %s1677_s4 = inlined_call_operand.vmem [shape: f32[12,128], index: 4, kind: input, shape index: {}]   ;;  %s1678_s5 = inlined_call_operand.vmem [shape: f32[2,384,128], index: 5, kind: input, shape index: {}]   ;;  %s1679_s6 = inlined_call_operand.vmem [shape: f32[2,1,128], index: 6, kind: input, shape index: {}]   ;;  %s1680_s7 = inlined_call_operand.hbm [shape: f32[12,128], index: 7, kind: output, shape index: {0}]   ;;  %s1681_s8 = inlined_call_operand.vmem [shape: f32[16,128], index: 8, kind: output, shape index: {1}]  }
   0x1   :  { %v31_v0 = vld [vmem:[%s1675_s2] sm:$0xff]  ;;  %v32_v1 = vld [vmem:[%s1675_s2 + $0x8] sm:$0xff]  ;;  %1205 = vset.pattern.permute.xlu0 %v1230_v4  ;;  %v222_v17 = vld [vmem:[%s1678_s5 + $0x90] sm:$0xff] }
   0x2   :  { %v29_v2 = vld [vmem:[%s1673_s0] sm:$0xff]  ;;  %v1061_v3 = vpack.c.bf16 %v32_v1, %v31_v0  ;;  %v116_v6 = vld [vmem:[%s1674_s1 + $0x8] sm:$0xf]  ;;  %v223_v18 = vld [vmem:[%s1678_s5 + $0x98] sm:$0xff] }
   0x3   :  { %981 = vmatprep.mubr.msk.f32.mxu0 %vm33_vm0, %v29_v2  ;;  %v115_v5 = vld [vmem:[%s1674_s1] sm:$0xff]  ;;  %v30_v7 = vld [vmem:[%s1673_s0 + $0x8] sm:$0xf]  ;;  %654 = vxpose.xlu1.b32.start [1/2] (short) (narrow) %v29_v2, 16  ;;  %v206_v19 = vld [vmem:[%s1678_s5 + $0x10] sm:$0xff]  ;;  %v1069_v20 = vpack.c.bf16 %v223_v18, %v222_v17 }
   0x4   :  { %119 = vperm.xlu0 %1205, %v115_v5   ;;  %v220_v8 = vld [vmem:[%s1678_s5 + $0x80] sm:$0xff]  ;;  %v221_v9 = vld [vmem:[%s1678_s5 + $0x88] sm:$0xff]  ;;  %1062 = vmatprep.subr.bf16.mxu0 %v1061_v3  ;;  %v207_v21 = vld [vmem:[%s1678_s5 + $0x18] sm:$0xff] }
   0x5   :  { %v204_v10 = vld [vmem:[%s1678_s5] sm:$0xff]  ;;  %v1065_v11 = vpack.c.bf16 %v221_v9, %v220_v8  ;;  %v205_v12 = vld [vmem:[%s1678_s5 + $0x8] sm:$0xff]  ;;  %1064 = vmatpush3.bf16.msra.mxu0 %v1061_v3  ;;  %v238_v22 = vld [vmem:[%s1678_s5 + $0x110] sm:$0xff]  ;;  %v1071_v24 = vpack.c.bf16 %v207_v21, %v206_v19 }
   0x6   :  { %v236_v13 = vld [vmem:[%s1678_s5 + $0x100] sm:$0xff]  ;;  %v237_v14 = vld [vmem:[%s1678_s5 + $0x108] sm:$0xff]  ;;  %v1067_v15 = vpack.c.bf16 %v205_v12, %v204_v10  ;;  %v239_v23 = vld [vmem:[%s1678_s5 + $0x118] sm:$0xff] }
   0x7   :  { %v1097_v16 = vpack.c.bf16 %v237_v14, %v236_v13  ;;  %1066 = vmatprep.subr.bf16.mxu1 %v1065_v11  ;;  %v1101_v25 = vpack.c.bf16 %v239_v23, %v238_v22  ;;  %v224_v26 = vld [vmem:[%s1678_s5 + $0xa0] sm:$0xff]  ;;  %v225_v27 = vld [vmem:[%s1678_s5 + $0xa8] sm:$0xff]  ;;  %v226_v33 = vld [vmem:[%s1678_s5 + $0xb0] sm:$0xff] }
   0x8   :  { %124 = vperm.xlu0 %1205, %v116_v6   ;;  %1068 = vmatpush3.bf16.msra.mxu1 %v1067_v15  ;;  %v208_v28 = vld [vmem:[%s1678_s5 + $0x20] sm:$0xff]  ;;  %v1073_v29 = vpack.c.bf16 %v225_v27, %v224_v26  ;;  %v209_v30 = vld [vmem:[%s1678_s5 + $0x28] sm:$0xff]  ;;  %v227_v34 = vld [vmem:[%s1678_s5 + $0xb8] sm:$0xff] }
   0x9   :  { %982 = vmatmul.mubr.msk.f32.vlgmr.msra.gmra.mrb[0].mxu0 %vm33_vm0, %v30_v7  ;;  %1098 = vmatprep.subr.bf16.mxu0 %v1097_v16  ;;  %v240_v31 = vld [vmem:[%s1678_s5 + $0x120] sm:$0xff]  ;;  %v241_v32 = vld [vmem:[%s1678_s5 + $0x128] sm:$0xff]  ;;  %v1075_v36 = vpack.c.bf16 %v209_v30, %v208_v28  ;;  %v242_v37 = vld [vmem:[%s1678_s5 + $0x130] sm:$0xff]  ;;  %v1077_v39 = vpack.c.bf16 %v227_v34, %v226_v33 }
   0xa   :  { %1100 = vmatpush3.bf16.msra.mxu0 %v1097_v16  ;;  %1070 = vmatprep.subr.bf16.mxu1 %v1069_v20  ;;  %v1105_v35 = vpack.c.bf16 %v241_v32, %v240_v31  ;;  %v243_v38 = vld [vmem:[%s1678_s5 + $0x138] sm:$0xff]  ;;  %v210_v40 = vld [vmem:[%s1678_s5 + $0x30] sm:$0xff] }
   0xb   :  { %1102 = vmatprep.subr.bf16.mxu0 %v1101_v25  ;;  %v211_v41 = vld [vmem:[%s1678_s5 + $0x38] sm:$0xff] }
   0xc   :  { %1072 = vmatpush3.bf16.msra.mxu1 %v1071_v24 }
   0xd   :  { %1074 = vmatprep.subr.bf16.mxu1 %v1073_v29 }
   0xe   :  { %14 = vsyncpa [#allocation3], 0  ;;  %1104 = vmatpush3.bf16.msra.mxu0 %v1101_v25  ;;  %v228_v42 = vld [vmem:[%s1678_s5 + $0xc0] sm:$0xff]  ;;  %v229_v43 = vld [vmem:[%s1678_s5 + $0xc8] sm:$0xff]  ;;  %v1109_v44 = vpack.c.bf16 %v243_v38, %v242_v37  ;;  %v1079_v45 = vpack.c.bf16 %v211_v41, %v210_v40  ;;  %v144_v23 = vlaneseq  ;;  %vm185_vm3 = vcmask 1040384  }
   0xf   :  { %1106 = vmatprep.subr.bf16.mxu0 %v1105_v35  ;;  %v1081_v46 = vpack.c.bf16 %v229_v43, %v228_v42  ;;  %v212_v47 = vld [vmem:[%s1678_s5 + $0x40] sm:$0xff]  ;;  %v213_v48 = vld [vmem:[%s1678_s5 + $0x48] sm:$0xff]  ;;  %v230_v53 = vld [vmem:[%s1678_s5 + $0xd0] sm:$0xff]  ;;  %vm194_vm4 = vcmask 1046528   ;;  %vm200_vm6 = vcmask 1042432   ;;  %v1231_v42 = vmov 0.0  }
  0x10   :  { %1076 = vmatpush3.bf16.msra.mxu1 %v1075_v36  ;;  %v1083_v49 = vpack.c.bf16 %v213_v48, %v212_v47  ;;  %v244_v50 = vld [vmem:[%s1678_s5 + $0x140] sm:$0xff]  ;;  %v245_v51 = vld [vmem:[%s1678_s5 + $0x148] sm:$0xff]  ;;  %v231_v54 = vld [vmem:[%s1678_s5 + $0xd8] sm:$0xff]  ;;  %v145_v24 = vshrl.u32 %v144_v23, 7  ;;  %vm686_vm8 = vcmask 97280   ;;  %vm693_vm9 = vcmask 1043456  }
  0x11   :  { %1078 = vmatprep.subr.bf16.mxu1 %v1077_v39  ;;  %v1113_v52 = vpack.c.bf16 %v245_v51, %v244_v50  ;;  %v1085_v55 = vpack.c.bf16 %v231_v54, %v230_v53  ;;  %v214_v56 = vld [vmem:[%s1678_s5 + $0x50] sm:$0xff]  ;;  %v215_v57 = vld [vmem:[%s1678_s5 + $0x58] sm:$0xff]  ;;  %v232_v62 = vld [vmem:[%s1678_s5 + $0xe0] sm:$0xff]  ;;  %vm1232_vm10 = vmmov 1  }
  0x12   :  { %1108 = vmatpush3.bf16.msra.mxu0 %v1105_v35  ;;  %v1087_v58 = vpack.c.bf16 %v215_v57, %v214_v56  ;;  %v246_v59 = vld [vmem:[%s1678_s5 + $0x150] sm:$0xff]  ;;  %v247_v60 = vld [vmem:[%s1678_s5 + $0x158] sm:$0xff]  ;;  %v233_v63 = vld [vmem:[%s1678_s5 + $0xe8] sm:$0xff]  ;;  %v146_v28 = vadd.s32 8, %v145_v24  ;;  %v151_v32 = vand.u32 3, %v145_v24 }
  0x13   :  { %1110 = vmatprep.subr.bf16.mxu0 %v1109_v44  ;;  %v1117_v61 = vpack.c.bf16 %v247_v60, %v246_v59  ;;  %v1089_v0 = vpack.c.bf16 %v233_v63, %v232_v62  ;;  %v216_v1 = vld [vmem:[%s1678_s5 + $0x60] sm:$0xff]  ;;  %v217_v2 = vld [vmem:[%s1678_s5 + $0x68] sm:$0xff]  ;;  %v234_v7 = vld [vmem:[%s1678_s5 + $0xf0] sm:$0xff] }
  0x14   :  { %1080 = vmatpush3.bf16.msra.mxu1 %v1079_v45  ;;  %v248_v3 = vld [vmem:[%s1678_s5 + $0x160] sm:$0xff]  ;;  %v1091_v4 = vpack.c.bf16 %v217_v2, %v216_v1  ;;  %v249_v5 = vld [vmem:[%s1678_s5 + $0x168] sm:$0xff]  ;;  %v235_v8 = vld [vmem:[%s1678_s5 + $0xf8] sm:$0xff]  ;;  %v158_v36 = vand.u32 3, %v146_v28  ;;  %vm171_vm1 = vcmp.ne.s32.totalorder %v151_v32, 0  ;;  %vm177_vm2 = vcmp.ne.s32.totalorder %v151_v32, 3 }
  0x15   :  { %1082 = vmatprep.subr.bf16.mxu1 %v1081_v46  ;;  %v1121_v6 = vpack.c.bf16 %v249_v5, %v248_v3  ;;  %v1093_v9 = vpack.c.bf16 %v235_v8, %v234_v7  ;;  %v218_v10 = vld [vmem:[%s1678_s5 + $0x70] sm:$0xff]  ;;  %v219_v11 = vld [vmem:[%s1678_s5 + $0x78] sm:$0xff]  ;;  %v820_v16 = vld [vmem:[%s1678_s5 + $0x200] sm:$0xff]  ;;  %v1473_v43 = vsel %vm171_vm1, 1.0, %v1231_v42 }
  0x16   :  { %1112 = vmatpush3.bf16.msra.mxu0 %v1109_v44  ;;  %v250_v12 = vld [vmem:[%s1678_s5 + $0x170] sm:$0xff]  ;;  %v1095_v13 = vpack.c.bf16 %v219_v11, %v218_v10  ;;  %v251_v14 = vld [vmem:[%s1678_s5 + $0x178] sm:$0xff]  ;;  %v821_v17 = vld [vmem:[%s1678_s5 + $0x208] sm:$0xff]  ;;  %vm178_vm5 = vcmp.ne.s32.totalorder %v158_v36, 3  ;;  %v1475_v44 = vsel %vm177_vm2, 1.0, %v1231_v42  ;;  %vm1478_vm7 = vcmp.ne.s32.totalorder %v158_v36, 0 }
  0x17   :  { %1114 = vmatprep.subr.bf16.mxu0 %v1113_v52  ;;  %v1125_v15 = vpack.c.bf16 %v251_v14, %v250_v12  ;;  %v1129_v18 = vpack.c.bf16 %v821_v17, %v820_v16  ;;  %v836_v19 = vld [vmem:[%s1678_s5 + $0x280] sm:$0xff]  ;;  %v837_v20 = vld [vmem:[%s1678_s5 + $0x288] sm:$0xff]  ;;  %v1495_v53 = vsel %vm178_vm5, 1.0, %v1231_v42  ;;  %v838_v56 = vld [vmem:[%s1678_s5 + $0x290] sm:$0xff]  ;;  %v1513_v62 = vsel %vm1478_vm7, 1.0, %v1231_v42 }
  0x18   :  { %1084 = vmatpush3.bf16.msra.mxu1 %v1083_v49  ;;  %v1457_v21 = vpack.c.bf16 %v837_v20, %v836_v19  ;;  %v798_v27 = vld [vmem:[%s1676_s3] ss:$0 sm:$0xff]  ;;  %v139_v34 = vld [vmem:[%s1677_s4 + $0x8] sm:$0xf]  ;;  %v839_v57 = vld [vmem:[%s1678_s5 + $0x298] sm:$0xff] }
  0x19   :  { %1086 = vmatprep.subr.bf16.mxu1 %v1085_v55  ;;  %v138_v38 = vld [vmem:[%s1677_s4] sm:$0xff]  ;;  %v805_v51 = vld [vmem:[%s1678_s5 + $0x188] sm:$0xff]  ;;  %v823_v55 = vld [vmem:[%s1678_s5 + $0x218] sm:$0xff] }
  0x1a   :  { %1116 = vmatpush3.bf16.msra.mxu0 %v1113_v52  ;;  %v804_v50 = vld [vmem:[%s1678_s5 + $0x180] sm:$0xff]  ;;  %v822_v52 = vld [vmem:[%s1678_s5 + $0x210] sm:$0xff]  ;;  %v825_v7 = vld [vmem:[%s1678_s5 + $0x228] sm:$0xff] }
  0x1b   :  { %1118 = vmatprep.subr.bf16.mxu0 %v1117_v61  ;;  %v1131_v63 = vpack.c.bf16 %v805_v51, %v804_v50  ;;  %v1133_v2 = vpack.c.bf16 %v823_v55, %v822_v52  ;;  %v806_v3 = vld [vmem:[%s1678_s5 + $0x190] sm:$0xff]  ;;  %v824_v5 = vld [vmem:[%s1678_s5 + $0x220] sm:$0xff]  ;;  %v809_v14 = vld [vmem:[%s1678_s5 + $0x1a8] sm:$0xff] }
  0x1c   :  { %1088 = vmatpush3.bf16.msra.mxu1 %v1087_v58  ;;  %v840_v8 = vld [vmem:[%s1678_s5 + $0x2a0] sm:$0xff]  ;;  %v1137_v12 = vpack.c.bf16 %v825_v7, %v824_v5  ;;  %v826_v16 = vld [vmem:[%s1678_s5 + $0x230] sm:$0xff]  ;;  %v827_v17 = vld [vmem:[%s1678_s5 + $0x238] sm:$0xff] }
  0x1d   :  { %1090 = vmatprep.subr.bf16.mxu1 %v1089_v0  ;;  %v1141_v19 = vpack.c.bf16 %v827_v17, %v826_v16  ;;  %v810_v20 = vld [vmem:[%s1678_s5 + $0x1b0] sm:$0xff]  ;;  %v828_v23 = vld [vmem:[%s1678_s5 + $0x240] sm:$0xff]  ;;  %v829_v24 = vld [vmem:[%s1678_s5 + $0x248] sm:$0xff] }
  0x1e   :  { %1120 = vmatpush3.bf16.msra.mxu0 %v1117_v61  ;;  %v842_v28 = vld [vmem:[%s1678_s5 + $0x2b0] sm:$0xff]  ;;  %v815_v36 = vld [vmem:[%s1678_s5 + $0x1d8] sm:$0xff]  ;;  %v833_v46 = vld [vmem:[%s1678_s5 + $0x268] sm:$0xff] }
  0x1f   :  { %1122 = vmatprep.subr.bf16.mxu0 %v1121_v6  ;;  %v830_v32 = vld [vmem:[%s1678_s5 + $0x250] sm:$0xff]  ;;  %v847_v52 = vld [vmem:[%s1678_s5 + $0x2d8] sm:$0xff]  ;;  %vm1194_vm11 = vmpackc.low %vm693_vm9, %vm1232_vm10 }
  0x20   :  { %1092 = vmatpush3.bf16.msra.mxu1 %v1091_v4  ;;  %v807_v4 = vld [vmem:[%s1678_s5 + $0x198] sm:$0xff]  ;;  %v846_v50 = vld [vmem:[%s1678_s5 + $0x2d0] sm:$0xff] }
  0x21   :  { %1094 = vmatprep.subr.bf16.mxu1 %v1093_v9  ;;  %v841_v9 = vld [vmem:[%s1678_s5 + $0x2a8] sm:$0xff]  ;;  %v1135_v11 = vpack.c.bf16 %v807_v4, %v806_v3  ;;  %v834_v55 = vld [vmem:[%s1678_s5 + $0x270] sm:$0xff] }
  0x22   :  { %1124 = vmatpush3.bf16.msra.mxu0 %v1121_v6  ;;  %v1165_v6 = vpack.c.bf16 %v839_v57, %v838_v56  ;;  %v835_v56 = vld [vmem:[%s1678_s5 + $0x278] sm:$0xff]  ;;  %v653_v4 = vld [vmem:[%s1673_s0 + $0x8] sm:$0xf] }
  0x23   :  { %1126 = vmatprep.subr.bf16.mxu0 %v1125_v15  ;;  %v1157_v57 = vpack.c.bf16 %v835_v56, %v834_v55  ;;  %655 = vxpose.xlu1.b32.end [2/2] (short) (narrow) %v653_v4, 16 }
  0x24   :  { %1096 = vmatpush3.bf16.msra.mxu1 %v1095_v13  ;;  %v808_v13 = vld [vmem:[%s1678_s5 + $0x1a0] sm:$0xff] }
  0x25   :  { %1130 = vmatprep.subr.bf16.mxu1 %v1129_v18  ;;  %v1139_v18 = vpack.c.bf16 %v809_v14, %v808_v13 }
  0x26   :  { %1128 = vmatpush3.bf16.msra.mxu0 %v1125_v15  ;;  %v1169_v15 = vpack.c.bf16 %v841_v9, %v840_v8  ;;  %v803_v8 = vld [vmem:[%s1679_s6] ss:$0 sm:$0xff] }
  0x27   :  { %1162 = vmatprep.subr.bf16.mxu0 %v1457_v21 }
  0x83   :  { %v120_v22 = vpop.permute.xlu0 %119 }
  0x87   :  { %v125_v25 = vpop.permute.xlu0 %124 }
  0xdc   :  { %v983_v26 = vpop.f32.mrb[0].mxu0 }
  0xdd   :  { %v128_v29 = vmul.f32 %v983_v26, %v125_v25  ;;  %v106_v30 = vpop.f32.mrb[1].mxu0  ;;  %v1145_v25 = vpack.c.bf16 %v829_v24, %v828_v23  ;;  %v812_v26 = vld [vmem:[%s1678_s5 + $0x1c0] sm:$0xff] }
  0xde   :  { %v127_v31 = vmul.f32 %v120_v22, %v106_v30  ;;  %v843_v30 = vld [vmem:[%s1678_s5 + $0x2b8] sm:$0xff] }
  0xdf   :  { %v137_v33 = vadd.f32 %v798_v27, %v128_v29 }
  0xe0   :  { %v136_v35 = vadd.f32 %v798_v27, %v127_v31  ;;  %v813_v27 = vld [vmem:[%s1678_s5 + $0x1c8] sm:$0xff]  ;;  %v1173_v31 = vpack.c.bf16 %v843_v30, %v842_v28 }
  0xe1   :  { %v141_v37 = vmax.f32 %v137_v33, 0.0  ;;  %v1147_v29 = vpack.c.bf16 %v813_v27, %v812_v26  ;;  %v831_v33 = vld [vmem:[%s1678_s5 + $0x258] sm:$0xff] }
  0xe2   :  { %v140_v39 = vmax.f32 %v136_v35, 0.0  ;;  %v814_v35 = vld [vmem:[%s1678_s5 + $0x1d0] sm:$0xff] }
  0xe3   :  { %v1469_v40 = vadd.f32 %v141_v37, %v139_v34  ;;  %v1149_v34 = vpack.c.bf16 %v831_v33, %v830_v32  ;;  %v844_v37 = vld [vmem:[%s1678_s5 + $0x2c0] sm:$0xff] }
  0xe4   :  { %v1471_v41 = vadd.f32 %v140_v39, %v138_v38  ;;  %v1151_v38 = vpack.c.bf16 %v815_v36, %v814_v35  ;;  %v845_v39 = vld [vmem:[%s1678_s5 + $0x2c8] sm:$0xff] }
  0xe5   :  { %v196_v45 = vrot.slane %v1469_v40, 1  ;;  %v187_v49 = vrot.slane %v1469_v40, 7  ;;  %v1177_v42 = vpack.c.bf16 %v845_v39, %v844_v37 }
  0xe6   :  { %323 = vmatprep.mubr.f32.mxu1 %v1471_v41  ;;  %v186_v47 = vrot.slane %v1471_v41, 7  ;;  %v195_v48 = vrot.slane %v1471_v41, 1 }
  0xe7   :  { %v201_v54 = vsel %vm200_vm6, %v196_v45, 0.0 }
  0xe8   :  { %v191_v58 = vsel %vm185_vm3, 0.0, %v186_v47  ;;  %v197_v59 = vsel %vm194_vm4, %v195_v48, %v196_v45  ;;  %v203_v0 = vmul.f32 %v1495_v53, %v201_v54  ;;  %v188_v1 = vsel %vm185_vm3, %v186_v47, %v187_v49  ;;  %v832_v45 = vld [vmem:[%s1678_s5 + $0x260] sm:$0xff]  ;;  %v817_v49 = vld [vmem:[%s1678_s5 + $0x1e8] sm:$0xff] }
  0xe9   :  { %v192_v60 = vmul.f32 %v1473_v43, %v191_v58  ;;  %v202_v61 = vmul.f32 %v1475_v44, %v197_v59  ;;  %v193_v10 = vmul.f32 %v1513_v62, %v188_v1  ;;  %v1153_v47 = vpack.c.bf16 %v833_v46, %v832_v45  ;;  %v816_v48 = vld [vmem:[%s1678_s5 + $0x1e0] sm:$0xff]  ;;  %v818_v58 = vld [vmem:[%s1678_s5 + $0x1f0] sm:$0xff]  ;;  %v819_v59 = vld [vmem:[%s1678_s5 + $0x1f8] sm:$0xff] }
  0xea   :  { %v1155_v51 = vpack.c.bf16 %v817_v49, %v816_v48  ;;  %v1181_v54 = vpack.c.bf16 %v847_v52, %v846_v50  ;;  %v850_v1 = vld [vmem:[%s1678_s5 + $0x2f0] sm:$0xff] }
  0xeb   :  { %324 = vmatmul.mubr.f32.vlgmr.msra.gmra.mrb[0].mxu1 %v192_v60  ;;  %1016 = vmatprep.mubr.f32.mxu0 %v202_v61  ;;  %v848_v60 = vld [vmem:[%s1678_s5 + $0x2e0] sm:$0xff]  ;;  %v1159_v61 = vpack.c.bf16 %v819_v59, %v818_v58 }
  0xec   :  { %328 = vmatprep.mubr.f32.mxu1 %v1469_v40  ;;  %1017 = vmatmul.mubr.f32.vlgmr.msra.gmra.mrb[2].mxu0 %v203_v0 }
  0xed   :  { %1132 = vmatpush3.bf16.msra.mxu1 %v1131_v63  ;;  %1164 = vmatpush3.bf16.msra.mxu0 %v1457_v21  ;;  %v811_v21 = vld [vmem:[%s1678_s5 + $0x1b8] sm:$0xff]  ;;  %v849_v63 = vld [vmem:[%s1678_s5 + $0x2e8] sm:$0xff] }
  0xee   :  { %1134 = vmatprep.subr.bf16.mxu1 %v1133_v2  ;;  %1166 = vmatprep.subr.bf16.mxu0 %v1165_v6  ;;  %v1143_v22 = vpack.c.bf16 %v811_v21, %v810_v20  ;;  %v1185_v0 = vpack.c.bf16 %v849_v63, %v848_v60  ;;  %v851_v2 = vld [vmem:[%s1678_s5 + $0x2f8] sm:$0xff] }
  0xef   :  { %329 = vmatmul.mubr.f32.gmra.mrb[2].mxu1 %v193_v10  ;;  %v1189_v3 = vpack.c.bf16 %v851_v2, %v850_v1 }
  0xf1   :  { %1136 = vmatpush3.bf16.msra.mxu1 %v1135_v11  ;;  %1168 = vmatpush3.bf16.msra.mxu0 %v1165_v6 }
  0xf2   :  { %1138 = vmatprep.subr.bf16.mxu1 %v1137_v12  ;;  %1170 = vmatprep.subr.bf16.mxu0 %v1169_v15 }
  0xf5   :  { %1140 = vmatpush3.bf16.msra.mxu1 %v1139_v18  ;;  %1172 = vmatpush3.bf16.msra.mxu0 %v1169_v15 }
  0xf6   :  { %1142 = vmatprep.subr.bf16.mxu1 %v1141_v19  ;;  %1174 = vmatprep.subr.bf16.mxu0 %v1173_v31 }
  0xf9   :  { %1144 = vmatpush3.bf16.msra.mxu1 %v1143_v22  ;;  %1176 = vmatpush3.bf16.msra.mxu0 %v1173_v31 }
  0xfa   :  { %1146 = vmatprep.subr.bf16.mxu1 %v1145_v25  ;;  %1178 = vmatprep.subr.bf16.mxu0 %v1177_v42 }
  0xfd   :  { %1148 = vmatpush3.bf16.msra.mxu1 %v1147_v29  ;;  %1180 = vmatpush3.bf16.msra.mxu0 %v1177_v42 }
  0xfe   :  { %1150 = vmatprep.subr.bf16.mxu1 %v1149_v34  ;;  %1182 = vmatprep.subr.bf16.mxu0 %v1181_v54  ;;  %v853_v34 = vld [vmem:[%s1679_s6 + $0x1] ss:$0 sm:$0xff]  ;;  %s1233_s6 = smov [#allocation2]  }
  0xff   :  { %s781_s18 = sshll.u32 %s1233_s6, 4  ;;  %s782_s18 = int_to_ptr.vmem [resolvable:$true] %s781_s18 }
 0x100   :  { %s1206_s19 = scalar_lea.vmem %s782_s18, 256  ;;  %p1211_p1 = scmp.lt.s32.totalorder %s782_s18, %s782_s18 }
 0x101   :  { %1152 = vmatpush3.bf16.msra.mxu1 %v1151_v38  ;;  %1184 = vmatpush3.bf16.msra.mxu0 %v1181_v54  ;;  %p1207_p0 = scmp.ne.s32.totalorder %s782_s18, %s1206_s19  ;;  %p1212_p2 = scmp.lt.s32.totalorder %s1206_s19, %s1206_s19 }
 0x102   :  { %1154 = vmatprep.subr.bf16.mxu1 %v1153_v47  ;;  %1186 = vmatprep.subr.bf16.mxu0 %v1185_v0 }
 0x103   :  { %p1213_p3 = por %p1212_p2, %p1211_p1 }
 0x105   :  { %1156 = vmatpush3.bf16.msra.mxu1 %v1155_v51  ;;  %1188 = vmatpush3.bf16.msra.mxu0 %v1185_v0  ;;  %p1214_p4 = pnand %p1213_p3, %p1207_p0 }
 0x106   :  { %1158 = vmatprep.subr.bf16.mxu1 %v1157_v57  ;;  %1190 = vmatprep.subr.bf16.mxu0 %v1189_v3 }
 0x109   :  { %1160 = vmatpush3.bf16.msra.mxu1 %v1159_v61  ;;  %1192 = vmatpush3.bf16.msra.mxu0 %v1189_v3 }
 0x1be   :  { %v893_v5 = vpop.f32.mrb[0].mxu1 }
 0x1bf   :  { %v894_v6 = vpop.f32.mrb[1].mxu1  ;;  %v1018_v7 = vpop.f32.mrb[2].mxu0 }
 0x1c0   :  { %v895_v9 = vadd.f32 %v894_v6, %v893_v5  ;;  %v400_v10 = vpop.f32.mrb[3].mxu0 }
 0x1c2   :  { %v326_v11 = vadd.f32 %v895_v9, %v803_v8  ;;  %v896_v12 = vpop.f32.mrb[2].mxu1 }
 0x1c3   :  { %v897_v13 = vpop.f32.mrb[3].mxu1 }
 0x1c4   :  { %v401_v14 = vadd.f32 %v400_v10, %v326_v11  ;;  %v898_v15 = vadd.f32 %v897_v13, %v896_v12 }
 0x1c6   :  { %v409_v16 = vmax.f32 %v401_v14, 0.0  ;;  %v331_v17 = vadd.f32 %v898_v15, %v803_v8 }
 0x1c8   :  { %v411_v18 = vadd.f32 %v409_v16, %v1471_v41  ;;  %v406_v19 = vadd.f32 %v1018_v7, %v331_v17 }
 0x1ca   :  { %v415_v20 = vrot.slane %v411_v18, 7  ;;  %v410_v21 = vmax.f32 %v406_v19, 0.0  ;;  %552 = vmatprep.mubr.f32.mxu1 %v411_v18  ;;  %v423_v26 = vrot.slane %v411_v18, 1 }
 0x1cc   :  { %v412_v22 = vadd.f32 %v410_v21, %v1469_v40  ;;  %v420_v23 = vsel %vm185_vm3, 0.0, %v415_v20 }
 0x1cd   :  { %v421_v24 = vmul.f32 %v1473_v43, %v420_v23  ;;  %v670_v43 = vpop.trf.xlu1 }
 0x1ce   :  { %v416_v25 = vrot.slane %v412_v22, 7  ;;  %v424_v27 = vrot.slane %v412_v22, 1 }
 0x1cf   :  { %553 = vmatmul.mubr.f32.vlgmr.msra.gmra.mrb[4].mxu1 %v421_v24 }
 0x1d0   :  { %557 = vmatprep.mubr.f32.mxu1 %v412_v22  ;;  %v417_v28 = vsel %vm185_vm3, %v415_v20, %v416_v25  ;;  %v425_v29 = vsel %vm194_vm4, %v423_v26, %v424_v27  ;;  %v428_v41 = vsel %vm200_vm6, %v424_v27, 0.0 }
 0x1d1   :  { %v422_v30 = vmul.f32 %v1513_v62, %v417_v28  ;;  %v429_v31 = vmul.f32 %v1475_v44, %v425_v29  ;;  %v430_v40 = vmul.f32 %v1495_v53, %v428_v41  ;;  %v671_v51 = vpop.trf.xlu1 }
 0x1d3   :  { %558 = vmatmul.mubr.f32.gmra.mrb[6].mxu1 %v422_v30  ;;  %1051 = vmatprep.mubr.f32.mxu0 %v429_v31 }
 0x1d4   :  { %1052 = vmatmul.mubr.f32.vlgmr.msra.gmra.mrb[4].mxu0 %v430_v40 }
 0x1d5   :  { %1058 = vmatprep.mubr.msk.f32.mxu0 %vm686_vm8, %v670_v43 }
 0x2a2   :  { %v949_v32 = vpop.f32.mrb[4].mxu1 }
 0x2a3   :  { %v950_v33 = vpop.f32.mrb[5].mxu1 }
 0x2a4   :  { %v951_v35 = vadd.f32 %v950_v33, %v949_v32 }
 0x2a6   :  { %v952_v36 = vpop.f32.mrb[6].mxu1  ;;  %v555_v62 = vadd.f32 %v951_v35, %v853_v34 }
 0x2a7   :  { %v953_v37 = vpop.f32.mrb[7].mxu1  ;;  %v1053_v44 = vpop.f32.mrb[4].mxu0 }
 0x2a8   :  { %v954_v38 = vadd.f32 %v953_v37, %v952_v36  ;;  %v629_v53 = vpop.f32.mrb[5].mxu0 }
 0x2a9   :  { %v630_v39 = vadd.f32 %v629_v53, %v555_v62 }
 0x2aa   :  { %v560_v42 = vadd.f32 %v954_v38, %v853_v34 }
 0x2ab   :  { %v638_v45 = vmax.f32 %v630_v39, 0.0 }
 0x2ac   :  { %v635_v46 = vadd.f32 %v1053_v44, %v560_v42 }
 0x2ad   :  { %v640_v47 = vadd.f32 %v638_v45, %v411_v18 }
 0x2ae   :  { %v639_v48 = vmax.f32 %v635_v46, 0.0 }
 0x2af   :  { %642 = vst [vmem:[#allocation2] sm:$0xff] %v640_v47 }
 0x2b0   :  { %v641_v49 = vadd.f32 %v639_v48, %v412_v22 }
 0x2b2   :  { %643 = vst [vmem:[#allocation2 + $0x8] sm:$0xf] %v641_v49  ;;  %v1193_v50 = vpack.c.bf16 %v641_v49, %v640_v47 }
 0x2b4   :  { %1195 = vmatprep.subr.msk.bf16.mxu0 %vm1194_vm11, %v1193_v50 }
 0x2b5   :  { %1198 = vmatpush3.bf16.msk.msra.mxu0 %vm1194_vm11, %v1193_v50 }
 0x2b8   :  { %1059 = vmatmul.mubr.msk.f32.vlgmr.msra.gmra.mrb[6].mxu0 %vm686_vm8, %v671_v51 }
 0x2b9   :  { %1217 = shalt.err (!%p1214_p4)
}
 0x2ba   :  { %s1218_s1 = scalar_lea.hbm %s1680_s7, 256 }
 0x2bb   :  { %p1219_p5 = scmp.ne.s32.totalorder %s1680_s7, %s1218_s1  ;;  %p1222_p6 = scmp.lt.u32.totalorder %s1218_s1, %s1680_s7 }
 0x2bd   :  { %p1224_p7 = pnand %p1222_p6, %p1219_p5 }
 0x2bf   :  { %1227 = shalt.err (!%p1224_p7)
}
 0x2c0   :  { %s1234_s26 = smov 128   ;;  %s1235_s27 = smov 8  }
 0x2c1   :  { %787 = dma.vmem_to_hbm [thread:$0]  %s782_s18, 256, %s1680_s7, [#allocation3], %s1234_s26, %s1234_s26, %s1235_s27  }
 0x38b   :  { %v1060_v52 = vpop.f32.mrb[6].mxu0 }
 0x38c   :  { %v763_v54 = vpop.f32.mrb[7].mxu0  ;;  %775 = vst [vmem:[%s1681_s8 + $0x8] sm:$0xff] %v1060_v52 }
 0x38d   :  { %774 = vst [vmem:[%s1681_s8] sm:$0xff] %v763_v54 }
 0x38e   :  { %1228 = dma.done.wait [#allocation3], 256  }
 0x38f   :  { %1229 = vsyncadd [#allocation3], 4294967040 }
 0x390   :  { %795 = vsyncpa [#allocation3], 1 }

// kernel: path_convolution_forward.4
= control target key start
LH: loop header
LB: loop body
LE: loop exit
PB: predicated region body
PF: predicated region fallthrough
CT: control target
= control target key end

     0   :  { %vm33_vm0 = vcmask 130048   ;;  %v1242_v4 = vmov 0   ;;  %s1688_s0 = inlined_call_operand.vmem [shape: f32[12,16], index: 0, kind: input, shape index: {}]   ;;  %s1689_s1 = inlined_call_operand.vmem [shape: f32[12,1], index: 1, kind: input, shape index: {}]   ;;  %s1690_s2 = inlined_call_operand.vmem [shape: f32[16,128], index: 2, kind: input, shape index: {}]   ;;  %s1691_s3 = inlined_call_operand.vmem [shape: f32[1,128], index: 3, kind: input, shape index: {}]   ;;  %s1692_s4 = inlined_call_operand.vmem [shape: f32[12,128], index: 4, kind: input, shape index: {}]   ;;  %s1693_s5 = inlined_call_operand.vmem [shape: f32[2,384,128], index: 5, kind: input, shape index: {}]   ;;  %s1694_s6 = inlined_call_operand.vmem [shape: f32[2,1,128], index: 6, kind: input, shape index: {}]   ;;  %s1695_s7 = inlined_call_operand.hbm [shape: f32[12,128], index: 7, kind: output, shape index: {0}]   ;;  %s1696_s8 = inlined_call_operand.vmem [shape: f32[16,128], index: 8, kind: output, shape index: {1}]  }
   0x1   :  { %v31_v0 = vld [vmem:[%s1690_s2] sm:$0xff]  ;;  %v32_v1 = vld [vmem:[%s1690_s2 + $0x8] sm:$0xff]  ;;  %1217 = vset.pattern.permute.xlu0 %v1242_v4  ;;  %v230_v17 = vld [vmem:[%s1693_s5 + $0x90] sm:$0xff] }
   0x2   :  { %v29_v2 = vld [vmem:[%s1688_s0] sm:$0xff]  ;;  %v1069_v3 = vpack.c.bf16 %v32_v1, %v31_v0  ;;  %v116_v6 = vld [vmem:[%s1689_s1 + $0x8] sm:$0xf]  ;;  %v231_v18 = vld [vmem:[%s1693_s5 + $0x98] sm:$0xff] }
   0x3   :  { %989 = vmatprep.mubr.msk.f32.mxu0 %vm33_vm0, %v29_v2  ;;  %v115_v5 = vld [vmem:[%s1689_s1] sm:$0xff]  ;;  %v30_v7 = vld [vmem:[%s1688_s0 + $0x8] sm:$0xf]  ;;  %662 = vxpose.xlu1.b32.start [1/2] (short) (narrow) %v29_v2, 16  ;;  %v214_v19 = vld [vmem:[%s1693_s5 + $0x10] sm:$0xff]  ;;  %v1077_v20 = vpack.c.bf16 %v231_v18, %v230_v17 }
   0x4   :  { %119 = vperm.xlu0 %1217, %v115_v5   ;;  %v228_v8 = vld [vmem:[%s1693_s5 + $0x80] sm:$0xff]  ;;  %v229_v9 = vld [vmem:[%s1693_s5 + $0x88] sm:$0xff]  ;;  %1070 = vmatprep.subr.bf16.mxu0 %v1069_v3  ;;  %v215_v21 = vld [vmem:[%s1693_s5 + $0x18] sm:$0xff] }
   0x5   :  { %v212_v10 = vld [vmem:[%s1693_s5] sm:$0xff]  ;;  %v1073_v11 = vpack.c.bf16 %v229_v9, %v228_v8  ;;  %v213_v12 = vld [vmem:[%s1693_s5 + $0x8] sm:$0xff]  ;;  %1072 = vmatpush3.bf16.msra.mxu0 %v1069_v3  ;;  %v246_v22 = vld [vmem:[%s1693_s5 + $0x110] sm:$0xff]  ;;  %v1079_v24 = vpack.c.bf16 %v215_v21, %v214_v19 }
   0x6   :  { %v244_v13 = vld [vmem:[%s1693_s5 + $0x100] sm:$0xff]  ;;  %v245_v14 = vld [vmem:[%s1693_s5 + $0x108] sm:$0xff]  ;;  %v1075_v15 = vpack.c.bf16 %v213_v12, %v212_v10  ;;  %v247_v23 = vld [vmem:[%s1693_s5 + $0x118] sm:$0xff] }
   0x7   :  { %v1105_v16 = vpack.c.bf16 %v245_v14, %v244_v13  ;;  %1074 = vmatprep.subr.bf16.mxu1 %v1073_v11  ;;  %v1109_v25 = vpack.c.bf16 %v247_v23, %v246_v22  ;;  %v232_v26 = vld [vmem:[%s1693_s5 + $0xa0] sm:$0xff]  ;;  %v233_v27 = vld [vmem:[%s1693_s5 + $0xa8] sm:$0xff]  ;;  %v234_v33 = vld [vmem:[%s1693_s5 + $0xb0] sm:$0xff] }
   0x8   :  { %124 = vperm.xlu0 %1217, %v116_v6   ;;  %1076 = vmatpush3.bf16.msra.mxu1 %v1075_v15  ;;  %v216_v28 = vld [vmem:[%s1693_s5 + $0x20] sm:$0xff]  ;;  %v1081_v29 = vpack.c.bf16 %v233_v27, %v232_v26  ;;  %v217_v30 = vld [vmem:[%s1693_s5 + $0x28] sm:$0xff]  ;;  %v235_v34 = vld [vmem:[%s1693_s5 + $0xb8] sm:$0xff] }
   0x9   :  { %990 = vmatmul.mubr.msk.f32.vlgmr.msra.gmra.mrb[0].mxu0 %vm33_vm0, %v30_v7  ;;  %1106 = vmatprep.subr.bf16.mxu0 %v1105_v16  ;;  %v248_v31 = vld [vmem:[%s1693_s5 + $0x120] sm:$0xff]  ;;  %v249_v32 = vld [vmem:[%s1693_s5 + $0x128] sm:$0xff]  ;;  %v1083_v36 = vpack.c.bf16 %v217_v30, %v216_v28  ;;  %v250_v37 = vld [vmem:[%s1693_s5 + $0x130] sm:$0xff]  ;;  %v1085_v39 = vpack.c.bf16 %v235_v34, %v234_v33 }
   0xa   :  { %1108 = vmatpush3.bf16.msra.mxu0 %v1105_v16  ;;  %1078 = vmatprep.subr.bf16.mxu1 %v1077_v20  ;;  %v1113_v35 = vpack.c.bf16 %v249_v32, %v248_v31  ;;  %v251_v38 = vld [vmem:[%s1693_s5 + $0x138] sm:$0xff]  ;;  %v218_v40 = vld [vmem:[%s1693_s5 + $0x30] sm:$0xff] }
   0xb   :  { %1110 = vmatprep.subr.bf16.mxu0 %v1109_v25  ;;  %v219_v41 = vld [vmem:[%s1693_s5 + $0x38] sm:$0xff] }
   0xc   :  { %1080 = vmatpush3.bf16.msra.mxu1 %v1079_v24 }
   0xd   :  { %1082 = vmatprep.subr.bf16.mxu1 %v1081_v29 }
   0xe   :  { %14 = vsyncpa [#allocation3], 0  ;;  %1112 = vmatpush3.bf16.msra.mxu0 %v1109_v25  ;;  %v236_v42 = vld [vmem:[%s1693_s5 + $0xc0] sm:$0xff]  ;;  %v237_v43 = vld [vmem:[%s1693_s5 + $0xc8] sm:$0xff]  ;;  %v1117_v44 = vpack.c.bf16 %v251_v38, %v250_v37  ;;  %v1087_v45 = vpack.c.bf16 %v219_v41, %v218_v40  ;;  %v144_v22 = vlaneseq  ;;  %vm193_vm9 = vcmask 1040384  }
   0xf   :  { %1114 = vmatprep.subr.bf16.mxu0 %v1113_v35  ;;  %v1089_v46 = vpack.c.bf16 %v237_v43, %v236_v42  ;;  %v220_v47 = vld [vmem:[%s1693_s5 + $0x40] sm:$0xff]  ;;  %v221_v48 = vld [vmem:[%s1693_s5 + $0x48] sm:$0xff]  ;;  %v238_v53 = vld [vmem:[%s1693_s5 + $0xd0] sm:$0xff]  ;;  %vm202_vm10 = vcmask 1046528   ;;  %vm208_vm12 = vcmask 1042432   ;;  %vm694_vm14 = vcmask 97280  }
  0x10   :  { %1084 = vmatpush3.bf16.msra.mxu1 %v1083_v36  ;;  %v1091_v49 = vpack.c.bf16 %v221_v48, %v220_v47  ;;  %v252_v50 = vld [vmem:[%s1693_s5 + $0x140] sm:$0xff]  ;;  %v253_v51 = vld [vmem:[%s1693_s5 + $0x148] sm:$0xff]  ;;  %v239_v54 = vld [vmem:[%s1693_s5 + $0xd8] sm:$0xff]  ;;  %v145_v23 = vshrl.u32 %v144_v22, 7  ;;  %vm701_vm15 = vcmask 1043456   ;;  %vm1244_vm0 = vmmov 1  }
  0x11   :  { %1086 = vmatprep.subr.bf16.mxu1 %v1085_v39  ;;  %v1121_v52 = vpack.c.bf16 %v253_v51, %v252_v50  ;;  %v1093_v55 = vpack.c.bf16 %v239_v54, %v238_v53  ;;  %v222_v56 = vld [vmem:[%s1693_s5 + $0x50] sm:$0xff]  ;;  %v223_v57 = vld [vmem:[%s1693_s5 + $0x58] sm:$0xff]  ;;  %v240_v62 = vld [vmem:[%s1693_s5 + $0xe0] sm:$0xff]  ;;  %v1243_v54 = vmov 0.0  }
  0x12   :  { %1116 = vmatpush3.bf16.msra.mxu0 %v1113_v35  ;;  %v1095_v58 = vpack.c.bf16 %v223_v57, %v222_v56  ;;  %v254_v59 = vld [vmem:[%s1693_s5 + $0x150] sm:$0xff]  ;;  %v255_v60 = vld [vmem:[%s1693_s5 + $0x158] sm:$0xff]  ;;  %v241_v63 = vld [vmem:[%s1693_s5 + $0xe8] sm:$0xff]  ;;  %v146_v24 = vadd.s32 8, %v145_v23  ;;  %v1472_v25 = vmul.u32.u64.low 2863311531, %v145_v23  ;;  %v1473_v26 = vmul.u32.u64.high 2863311531, %v145_v23, %v1472_v25 }
  0x13   :  { %1118 = vmatprep.subr.bf16.mxu0 %v1117_v44  ;;  %v1125_v61 = vpack.c.bf16 %v255_v60, %v254_v59  ;;  %v1097_v0 = vpack.c.bf16 %v241_v63, %v240_v62  ;;  %v224_v1 = vld [vmem:[%s1693_s5 + $0x60] sm:$0xff]  ;;  %v225_v2 = vld [vmem:[%s1693_s5 + $0x68] sm:$0xff]  ;;  %v242_v7 = vld [vmem:[%s1693_s5 + $0xf0] sm:$0xff] }
  0x14   :  { %1088 = vmatpush3.bf16.msra.mxu1 %v1087_v45  ;;  %v256_v3 = vld [vmem:[%s1693_s5 + $0x160] sm:$0xff]  ;;  %v1099_v4 = vpack.c.bf16 %v225_v2, %v224_v1  ;;  %v257_v5 = vld [vmem:[%s1693_s5 + $0x168] sm:$0xff]  ;;  %v243_v8 = vld [vmem:[%s1693_s5 + $0xf8] sm:$0xff]  ;;  %v1475_v27 = vmul.u32.u64.low 2863311531, %v146_v24  ;;  %v1476_v28 = vmul.u32.u64.high 2863311531, %v146_v24, %v1475_v27  ;;  %v153_v29 = vshrl.u32 %v1473_v26, 2 }
  0x15   :  { %1090 = vmatprep.subr.bf16.mxu1 %v1089_v46  ;;  %v1129_v6 = vpack.c.bf16 %v257_v5, %v256_v3  ;;  %v1101_v9 = vpack.c.bf16 %v243_v8, %v242_v7  ;;  %v226_v10 = vld [vmem:[%s1693_s5 + $0x70] sm:$0xff]  ;;  %v227_v11 = vld [vmem:[%s1693_s5 + $0x78] sm:$0xff]  ;;  %v828_v16 = vld [vmem:[%s1693_s5 + $0x200] sm:$0xff] }
  0x16   :  { %1120 = vmatpush3.bf16.msra.mxu0 %v1117_v44  ;;  %v258_v12 = vld [vmem:[%s1693_s5 + $0x170] sm:$0xff]  ;;  %v1103_v13 = vpack.c.bf16 %v227_v11, %v226_v10  ;;  %v259_v14 = vld [vmem:[%s1693_s5 + $0x178] sm:$0xff]  ;;  %v829_v17 = vld [vmem:[%s1693_s5 + $0x208] sm:$0xff]  ;;  %v164_v30 = vshrl.u32 %v1476_v28, 2  ;;  %v154_v31 = vmul.u32 6, %v153_v29 }
  0x17   :  { %1122 = vmatprep.subr.bf16.mxu0 %v1121_v52  ;;  %v1133_v15 = vpack.c.bf16 %v259_v14, %v258_v12  ;;  %v1137_v18 = vpack.c.bf16 %v829_v17, %v828_v16  ;;  %v844_v19 = vld [vmem:[%s1693_s5 + $0x280] sm:$0xff]  ;;  %v845_v20 = vld [vmem:[%s1693_s5 + $0x288] sm:$0xff]  ;;  %v830_v63 = vld [vmem:[%s1693_s5 + $0x210] sm:$0xff] }
  0x18   :  { %1092 = vmatpush3.bf16.msra.mxu1 %v1091_v49  ;;  %v1469_v21 = vpack.c.bf16 %v845_v20, %v844_v19  ;;  %v165_v32 = vmul.u32 6, %v164_v30  ;;  %v155_v34 = vsub.s32 %v145_v23, %v154_v31  ;;  %v806_v39 = vld [vmem:[%s1691_s3] ss:$0 sm:$0xff]  ;;  %v139_v46 = vld [vmem:[%s1692_s4 + $0x8] sm:$0xf]  ;;  %v831_v2 = vld [vmem:[%s1693_s5 + $0x218] sm:$0xff] }
  0x19   :  { %1094 = vmatprep.subr.bf16.mxu1 %v1093_v55  ;;  %v138_v49 = vld [vmem:[%s1692_s4] sm:$0xff]  ;;  %v813_v62 = vld [vmem:[%s1693_s5 + $0x188] sm:$0xff]  ;;  %v846_v3 = vld [vmem:[%s1693_s5 + $0x290] sm:$0xff] }
  0x1a   :  { %1124 = vmatpush3.bf16.msra.mxu0 %v1121_v52  ;;  %v166_v35 = vsub.s32 %v146_v24, %v165_v32  ;;  %vm169_vm1 = vcmp.ne.s32.totalorder %v155_v34, 0  ;;  %vm171_vm2 = vcmp.lt.s32.totalorder %v155_v34, 0  ;;  %v175_v37 = vadd.s32 6, %v155_v34  ;;  %v814_v14 = vld [vmem:[%s1693_s5 + $0x190] sm:$0xff]  ;;  %v832_v16 = vld [vmem:[%s1693_s5 + $0x220] sm:$0xff]  ;;  %v849_v20 = vld [vmem:[%s1693_s5 + $0x2a8] sm:$0xff] }
  0x1b   :  { %1126 = vmatprep.subr.bf16.mxu0 %v1125_v61  ;;  %vm173_vm5 = vmand %vm171_vm2, %vm169_vm1  ;;  %v848_v19 = vld [vmem:[%s1693_s5 + $0x2a0] sm:$0xff]  ;;  %v817_v26 = vld [vmem:[%s1693_s5 + $0x1a8] sm:$0xff] }
  0x1c   :  { %1096 = vmatpush3.bf16.msra.mxu1 %v1095_v58  ;;  %vm170_vm3 = vcmp.ne.s32.totalorder %v166_v35, 0  ;;  %vm172_vm4 = vcmp.lt.s32.totalorder %v166_v35, 0  ;;  %v176_v42 = vadd.s32 6, %v166_v35  ;;  %v177_v45 = vsel %vm173_vm5, %v175_v37, %v155_v34  ;;  %v816_v25 = vld [vmem:[%s1693_s5 + $0x1a0] sm:$0xff]  ;;  %v834_v28 = vld [vmem:[%s1693_s5 + $0x230] sm:$0xff]  ;;  %v819_v32 = vld [vmem:[%s1693_s5 + $0x1b8] sm:$0xff] }
  0x1d   :  { %1098 = vmatprep.subr.bf16.mxu1 %v1097_v0  ;;  %vm174_vm6 = vmand %vm172_vm4, %vm170_vm3  ;;  %vm179_vm7 = vcmp.ne.s32.totalorder %v177_v45, 0  ;;  %vm185_vm8 = vcmp.ne.s32.totalorder %v177_v45, 5  ;;  %v1177_v27 = vpack.c.bf16 %v849_v20, %v848_v19  ;;  %v1147_v29 = vpack.c.bf16 %v817_v26, %v816_v25  ;;  %v818_v31 = vld [vmem:[%s1693_s5 + $0x1b0] sm:$0xff]  ;;  %v836_v34 = vld [vmem:[%s1693_s5 + $0x240] sm:$0xff] }
  0x1e   :  { %1128 = vmatpush3.bf16.msra.mxu0 %v1125_v61  ;;  %v178_v50 = vsel %vm174_vm6, %v176_v42, %v166_v35  ;;  %v1493_v55 = vsel %vm179_vm7, 1.0, %v1243_v54  ;;  %v1495_v56 = vsel %vm185_vm8, 1.0, %v1243_v54  ;;  %v812_v61 = vld [vmem:[%s1693_s5 + $0x180] sm:$0xff]  ;;  %v837_v35 = vld [vmem:[%s1693_s5 + $0x248] sm:$0xff]  ;;  %vm1202_vm1 = vmpackc.low %vm701_vm15, %vm1244_vm0 }
  0x1f   :  { %1130 = vmatprep.subr.bf16.mxu0 %v1129_v6  ;;  %vm186_vm11 = vcmp.ne.s32.totalorder %v178_v50, 5  ;;  %vm180_vm13 = vcmp.ne.s32.totalorder %v178_v50, 0  ;;  %v1139_v10 = vpack.c.bf16 %v813_v62, %v812_v61  ;;  %v820_v37 = vld [vmem:[%s1693_s5 + $0x1c0] sm:$0xff]  ;;  %v853_v50 = vld [vmem:[%s1693_s5 + $0x2c8] sm:$0xff]  ;;  %v854_v61 = vld [vmem:[%s1693_s5 + $0x2d0] sm:$0xff] }
  0x20   :  { %1100 = vmatpush3.bf16.msra.mxu1 %v1099_v4  ;;  %v1511_v0 = vsel %vm186_vm11, 1.0, %v1243_v54  ;;  %v847_v4 = vld [vmem:[%s1693_s5 + $0x298] sm:$0xff]  ;;  %v811_v19 = vld [vmem:[%s1694_s6] ss:$0 sm:$0xff] }
  0x21   :  { %1102 = vmatprep.subr.bf16.mxu1 %v1101_v9  ;;  %v1528_v9 = vsel %vm180_vm13, 1.0, %v1243_v54  ;;  %v1173_v17 = vpack.c.bf16 %v847_v4, %v846_v3  ;;  %v840_v54 = vld [vmem:[%s1693_s5 + $0x260] sm:$0xff]  ;;  %v843_v3 = vld [vmem:[%s1693_s5 + $0x278] sm:$0xff] }
  0x22   :  { %1132 = vmatpush3.bf16.msra.mxu0 %v1129_v6 }
  0x23   :  { %1134 = vmatprep.subr.bf16.mxu0 %v1133_v15 }
  0x24   :  { %1104 = vmatpush3.bf16.msra.mxu1 %v1103_v13  ;;  %v1141_v13 = vpack.c.bf16 %v831_v2, %v830_v63  ;;  %v855_v63 = vld [vmem:[%s1693_s5 + $0x2d8] sm:$0xff]  ;;  %v842_v2 = vld [vmem:[%s1693_s5 + $0x270] sm:$0xff] }
  0x25   :  { %1138 = vmatprep.subr.bf16.mxu1 %v1137_v18  ;;  %v833_v18 = vld [vmem:[%s1693_s5 + $0x228] sm:$0xff]  ;;  %v1165_v4 = vpack.c.bf16 %v843_v3, %v842_v2 }
  0x26   :  { %1136 = vmatpush3.bf16.msra.mxu0 %v1133_v15  ;;  %v815_v15 = vld [vmem:[%s1693_s5 + $0x198] sm:$0xff]  ;;  %v1145_v24 = vpack.c.bf16 %v833_v18, %v832_v16 }
  0x27   :  { %1170 = vmatprep.subr.bf16.mxu0 %v1469_v21  ;;  %v1143_v23 = vpack.c.bf16 %v815_v15, %v814_v14  ;;  %v661_v15 = vld [vmem:[%s1688_s0 + $0x8] sm:$0xf] }
  0x28   :  { %663 = vxpose.xlu1.b32.end [2/2] (short) (narrow) %v661_v15, 16 }
  0x83   :  { %v120_v33 = vpop.permute.xlu0 %119 }
  0x87   :  { %v125_v36 = vpop.permute.xlu0 %124 }
  0xdc   :  { %v991_v38 = vpop.f32.mrb[0].mxu0 }
  0xdd   :  { %v128_v40 = vmul.f32 %v991_v38, %v125_v36  ;;  %v106_v41 = vpop.f32.mrb[1].mxu0  ;;  %v1153_v36 = vpack.c.bf16 %v837_v35, %v836_v34  ;;  %v821_v38 = vld [vmem:[%s1693_s5 + $0x1c8] sm:$0xff] }
  0xde   :  { %v127_v43 = vmul.f32 %v120_v33, %v106_v41  ;;  %v1151_v33 = vpack.c.bf16 %v819_v32, %v818_v31  ;;  %v851_v41 = vld [vmem:[%s1693_s5 + $0x2b8] sm:$0xff] }
  0xdf   :  { %v137_v44 = vadd.f32 %v806_v39, %v128_v40  ;;  %v1155_v40 = vpack.c.bf16 %v821_v38, %v820_v37 }
  0xe0   :  { %v136_v47 = vadd.f32 %v806_v39, %v127_v43  ;;  %v850_v39 = vld [vmem:[%s1693_s5 + $0x2b0] sm:$0xff] }
  0xe1   :  { %v141_v48 = vmax.f32 %v137_v44, 0.0  ;;  %v1181_v42 = vpack.c.bf16 %v851_v41, %v850_v39  ;;  %v838_v43 = vld [vmem:[%s1693_s5 + $0x250] sm:$0xff]  ;;  %v839_v44 = vld [vmem:[%s1693_s5 + $0x258] sm:$0xff] }
  0xe2   :  { %v140_v51 = vmax.f32 %v136_v47, 0.0  ;;  %v1157_v45 = vpack.c.bf16 %v839_v44, %v838_v43  ;;  %v823_v47 = vld [vmem:[%s1693_s5 + $0x1d8] sm:$0xff] }
  0xe3   :  { %v1489_v52 = vadd.f32 %v141_v48, %v139_v46  ;;  %v822_v46 = vld [vmem:[%s1693_s5 + $0x1d0] sm:$0xff]  ;;  %v852_v48 = vld [vmem:[%s1693_s5 + $0x2c0] sm:$0xff] }
  0xe4   :  { %v1491_v53 = vadd.f32 %v140_v51, %v138_v49  ;;  %v1159_v49 = vpack.c.bf16 %v823_v47, %v822_v46  ;;  %v1185_v51 = vpack.c.bf16 %v853_v50, %v852_v48 }
  0xe5   :  { %v204_v57 = vrot.slane %v1489_v52, 1  ;;  %v195_v60 = vrot.slane %v1489_v52, 7 }
  0xe6   :  { %331 = vmatprep.mubr.f32.mxu1 %v1491_v53  ;;  %v194_v58 = vrot.slane %v1491_v53, 7  ;;  %v203_v59 = vrot.slane %v1491_v53, 1 }
  0xe7   :  { %v209_v1 = vsel %vm208_vm12, %v204_v57, 0.0 }
  0xe8   :  { %v199_v5 = vsel %vm193_vm9, 0.0, %v194_v58  ;;  %v205_v6 = vsel %vm202_vm10, %v203_v59, %v204_v57  ;;  %v211_v11 = vmul.f32 %v1511_v0, %v209_v1  ;;  %v196_v12 = vsel %vm193_vm9, %v194_v58, %v195_v60  ;;  %v841_v57 = vld [vmem:[%s1693_s5 + $0x268] sm:$0xff]  ;;  %v824_v59 = vld [vmem:[%s1693_s5 + $0x1e0] sm:$0xff] }
  0xe9   :  { %v200_v7 = vmul.f32 %v1493_v55, %v199_v5  ;;  %v210_v8 = vmul.f32 %v1495_v56, %v205_v6  ;;  %v201_v22 = vmul.f32 %v1528_v9, %v196_v12  ;;  %v1161_v58 = vpack.c.bf16 %v841_v57, %v840_v54  ;;  %v825_v60 = vld [vmem:[%s1693_s5 + $0x1e8] sm:$0xff]  ;;  %v826_v5 = vld [vmem:[%s1693_s5 + $0x1f0] sm:$0xff]  ;;  %v827_v6 = vld [vmem:[%s1693_s5 + $0x1f8] sm:$0xff] }
  0xea   :  { %v1163_v62 = vpack.c.bf16 %v825_v60, %v824_v59  ;;  %v1189_v1 = vpack.c.bf16 %v855_v63, %v854_v61  ;;  %v858_v12 = vld [vmem:[%s1693_s5 + $0x2f0] sm:$0xff] }
  0xeb   :  { %332 = vmatmul.mubr.f32.vlgmr.msra.gmra.mrb[0].mxu1 %v200_v7  ;;  %1024 = vmatprep.mubr.f32.mxu0 %v210_v8  ;;  %v856_v7 = vld [vmem:[%s1693_s5 + $0x2e0] sm:$0xff]  ;;  %v1167_v8 = vpack.c.bf16 %v827_v6, %v826_v5 }
  0xec   :  { %336 = vmatprep.mubr.f32.mxu1 %v1489_v52  ;;  %1025 = vmatmul.mubr.f32.vlgmr.msra.gmra.mrb[2].mxu0 %v211_v11 }
  0xed   :  { %1140 = vmatpush3.bf16.msra.mxu1 %v1139_v10  ;;  %1172 = vmatpush3.bf16.msra.mxu0 %v1469_v21  ;;  %v835_v21 = vld [vmem:[%s1693_s5 + $0x238] sm:$0xff]  ;;  %v857_v10 = vld [vmem:[%s1693_s5 + $0x2e8] sm:$0xff] }
  0xee   :  { %1142 = vmatprep.subr.bf16.mxu1 %v1141_v13  ;;  %1174 = vmatprep.subr.bf16.mxu0 %v1173_v17  ;;  %v1149_v30 = vpack.c.bf16 %v835_v21, %v834_v28  ;;  %v1193_v11 = vpack.c.bf16 %v857_v10, %v856_v7  ;;  %v859_v13 = vld [vmem:[%s1693_s5 + $0x2f8] sm:$0xff] }
  0xef   :  { %337 = vmatmul.mubr.f32.gmra.mrb[2].mxu1 %v201_v22  ;;  %v1197_v14 = vpack.c.bf16 %v859_v13, %v858_v12 }
  0xf1   :  { %1144 = vmatpush3.bf16.msra.mxu1 %v1143_v23  ;;  %1176 = vmatpush3.bf16.msra.mxu0 %v1173_v17 }
  0xf2   :  { %1146 = vmatprep.subr.bf16.mxu1 %v1145_v24  ;;  %1178 = vmatprep.subr.bf16.mxu0 %v1177_v27 }
  0xf5   :  { %1148 = vmatpush3.bf16.msra.mxu1 %v1147_v29  ;;  %1180 = vmatpush3.bf16.msra.mxu0 %v1177_v27 }
  0xf6   :  { %1150 = vmatprep.subr.bf16.mxu1 %v1149_v30  ;;  %1182 = vmatprep.subr.bf16.mxu0 %v1181_v42 }
  0xf9   :  { %1152 = vmatpush3.bf16.msra.mxu1 %v1151_v33  ;;  %1184 = vmatpush3.bf16.msra.mxu0 %v1181_v42 }
  0xfa   :  { %1154 = vmatprep.subr.bf16.mxu1 %v1153_v36  ;;  %1186 = vmatprep.subr.bf16.mxu0 %v1185_v51 }
  0xfd   :  { %1156 = vmatpush3.bf16.msra.mxu1 %v1155_v40  ;;  %1188 = vmatpush3.bf16.msra.mxu0 %v1185_v51 }
  0xfe   :  { %1158 = vmatprep.subr.bf16.mxu1 %v1157_v45  ;;  %1190 = vmatprep.subr.bf16.mxu0 %v1189_v1  ;;  %v861_v45 = vld [vmem:[%s1694_s6 + $0x1] ss:$0 sm:$0xff]  ;;  %s1245_s6 = smov [#allocation2]  }
  0xff   :  { %s789_s18 = sshll.u32 %s1245_s6, 4  ;;  %s790_s18 = int_to_ptr.vmem [resolvable:$true] %s789_s18 }
 0x100   :  { %s1218_s19 = scalar_lea.vmem %s790_s18, 256  ;;  %p1223_p1 = scmp.lt.s32.totalorder %s790_s18, %s790_s18 }
 0x101   :  { %1160 = vmatpush3.bf16.msra.mxu1 %v1159_v49  ;;  %1192 = vmatpush3.bf16.msra.mxu0 %v1189_v1  ;;  %p1219_p0 = scmp.ne.s32.totalorder %s790_s18, %s1218_s19  ;;  %p1224_p2 = scmp.lt.s32.totalorder %s1218_s19, %s1218_s19 }
 0x102   :  { %1162 = vmatprep.subr.bf16.mxu1 %v1161_v58  ;;  %1194 = vmatprep.subr.bf16.mxu0 %v1193_v11 }
 0x103   :  { %p1225_p3 = por %p1224_p2, %p1223_p1 }
 0x105   :  { %1164 = vmatpush3.bf16.msra.mxu1 %v1163_v62  ;;  %1196 = vmatpush3.bf16.msra.mxu0 %v1193_v11  ;;  %p1226_p4 = pnand %p1225_p3, %p1219_p0 }
 0x106   :  { %1166 = vmatprep.subr.bf16.mxu1 %v1165_v4  ;;  %1198 = vmatprep.subr.bf16.mxu0 %v1197_v14 }
 0x109   :  { %1168 = vmatpush3.bf16.msra.mxu1 %v1167_v8  ;;  %1200 = vmatpush3.bf16.msra.mxu0 %v1197_v14 }
 0x1be   :  { %v901_v16 = vpop.f32.mrb[0].mxu1 }
 0x1bf   :  { %v902_v17 = vpop.f32.mrb[1].mxu1  ;;  %v1026_v18 = vpop.f32.mrb[2].mxu0 }
 0x1c0   :  { %v903_v20 = vadd.f32 %v902_v17, %v901_v16  ;;  %v408_v22 = vpop.f32.mrb[3].mxu0 }
 0x1c2   :  { %v334_v23 = vadd.f32 %v903_v20, %v811_v19  ;;  %v904_v24 = vpop.f32.mrb[2].mxu1 }
 0x1c3   :  { %v905_v25 = vpop.f32.mrb[3].mxu1 }
 0x1c4   :  { %v409_v26 = vadd.f32 %v408_v22, %v334_v23  ;;  %v906_v27 = vadd.f32 %v905_v25, %v904_v24 }
 0x1c6   :  { %v417_v28 = vmax.f32 %v409_v26, 0.0  ;;  %v339_v21 = vadd.f32 %v906_v27, %v811_v19 }
 0x1c8   :  { %v419_v29 = vadd.f32 %v417_v28, %v1491_v53  ;;  %v414_v30 = vadd.f32 %v1026_v18, %v339_v21 }
 0x1ca   :  { %v423_v31 = vrot.slane %v419_v29, 7  ;;  %v418_v32 = vmax.f32 %v414_v30, 0.0  ;;  %560 = vmatprep.mubr.f32.mxu1 %v419_v29  ;;  %v431_v37 = vrot.slane %v419_v29, 1 }
 0x1cc   :  { %v420_v33 = vadd.f32 %v418_v32, %v1489_v52  ;;  %v428_v34 = vsel %vm193_vm9, 0.0, %v423_v31 }
 0x1cd   :  { %v429_v35 = vmul.f32 %v1493_v55, %v428_v34  ;;  %v678_v55 = vpop.trf.xlu1 }
 0x1ce   :  { %v424_v36 = vrot.slane %v420_v33, 7  ;;  %v432_v38 = vrot.slane %v420_v33, 1 }
 0x1cf   :  { %561 = vmatmul.mubr.f32.vlgmr.msra.gmra.mrb[4].mxu1 %v429_v35 }
 0x1d0   :  { %565 = vmatprep.mubr.f32.mxu1 %v420_v33  ;;  %v425_v39 = vsel %vm193_vm9, %v423_v31, %v424_v36  ;;  %v433_v40 = vsel %vm202_vm10, %v431_v37, %v432_v38  ;;  %v436_v53 = vsel %vm208_vm12, %v432_v38, 0.0 }
 0x1d1   :  { %v430_v41 = vmul.f32 %v1528_v9, %v425_v39  ;;  %v437_v42 = vmul.f32 %v1495_v56, %v433_v40  ;;  %v438_v52 = vmul.f32 %v1511_v0, %v436_v53  ;;  %v679_v62 = vpop.trf.xlu1 }
 0x1d3   :  { %566 = vmatmul.mubr.f32.gmra.mrb[6].mxu1 %v430_v41  ;;  %1059 = vmatprep.mubr.f32.mxu0 %v437_v42 }
 0x1d4   :  { %1060 = vmatmul.mubr.f32.vlgmr.msra.gmra.mrb[4].mxu0 %v438_v52 }
 0x1d5   :  { %1066 = vmatprep.mubr.msk.f32.mxu0 %vm694_vm14, %v678_v55 }
 0x2a2   :  { %v957_v43 = vpop.f32.mrb[4].mxu1 }
 0x2a3   :  { %v958_v44 = vpop.f32.mrb[5].mxu1 }
 0x2a4   :  { %v959_v46 = vadd.f32 %v958_v44, %v957_v43 }
 0x2a6   :  { %v960_v47 = vpop.f32.mrb[6].mxu1  ;;  %v563_v9 = vadd.f32 %v959_v46, %v861_v45 }
 0x2a7   :  { %v961_v48 = vpop.f32.mrb[7].mxu1  ;;  %v1061_v56 = vpop.f32.mrb[4].mxu0 }
 0x2a8   :  { %v962_v49 = vadd.f32 %v961_v48, %v960_v47  ;;  %v637_v0 = vpop.f32.mrb[5].mxu0 }
 0x2a9   :  { %v638_v50 = vadd.f32 %v637_v0, %v563_v9 }
 0x2aa   :  { %v568_v51 = vadd.f32 %v962_v49, %v861_v45 }
 0x2ab   :  { %v646_v54 = vmax.f32 %v638_v50, 0.0 }
 0x2ac   :  { %v643_v57 = vadd.f32 %v1061_v56, %v568_v51 }
 0x2ad   :  { %v648_v58 = vadd.f32 %v646_v54, %v419_v29 }
 0x2ae   :  { %v647_v59 = vmax.f32 %v643_v57, 0.0 }
 0x2af   :  { %650 = vst [vmem:[#allocation2] sm:$0xff] %v648_v58 }
 0x2b0   :  { %v649_v60 = vadd.f32 %v647_v59, %v420_v33 }
 0x2b2   :  { %651 = vst [vmem:[#allocation2 + $0x8] sm:$0xf] %v649_v60  ;;  %v1201_v61 = vpack.c.bf16 %v649_v60, %v648_v58 }
 0x2b4   :  { %1203 = vmatprep.subr.msk.bf16.mxu0 %vm1202_vm1, %v1201_v61 }
 0x2b5   :  { %1206 = vmatpush3.bf16.msk.msra.mxu0 %vm1202_vm1, %v1201_v61 }
 0x2b8   :  { %1067 = vmatmul.mubr.msk.f32.vlgmr.msra.gmra.mrb[6].mxu0 %vm694_vm14, %v679_v62 }
 0x2b9   :  { %1229 = shalt.err (!%p1226_p4)
}
 0x2ba   :  { %s1230_s1 = scalar_lea.hbm %s1695_s7, 256 }
 0x2bb   :  { %p1231_p5 = scmp.ne.s32.totalorder %s1695_s7, %s1230_s1  ;;  %p1234_p6 = scmp.lt.u32.totalorder %s1230_s1, %s1695_s7 }
 0x2bd   :  { %p1236_p7 = pnand %p1234_p6, %p1231_p5 }
 0x2bf   :  { %1239 = shalt.err (!%p1236_p7)
}
 0x2c0   :  { %s1246_s26 = smov 128   ;;  %s1247_s27 = smov 8  }
 0x2c1   :  { %795 = dma.vmem_to_hbm [thread:$0]  %s790_s18, 256, %s1695_s7, [#allocation3], %s1246_s26, %s1246_s26, %s1247_s27  }
 0x38b   :  { %v1068_v63 = vpop.f32.mrb[6].mxu0 }
 0x38c   :  { %v771_v1 = vpop.f32.mrb[7].mxu0  ;;  %783 = vst [vmem:[%s1696_s8 + $0x8] sm:$0xff] %v1068_v63 }
 0x38d   :  { %782 = vst [vmem:[%s1696_s8] sm:$0xff] %v771_v1 }
 0x38e   :  { %1240 = dma.done.wait [#allocation3], 256  }
 0x38f   :  { %1241 = vsyncadd [#allocation3], 4294967040 }
 0x390   :  { %803 = vsyncpa [#allocation3], 1 }

</bundles_post_ra>
